<compile_context>
chip_gen: v5e
topology: v5e:2x2
jax: 0.10.0
libtpu: 0.0.40
codegen_flags: <defaults>
</compile_context>

<pallas_src>
import functools

import jax
import jax.numpy as jnp
from jax.experimental import pallas as pl
from jax.experimental.pallas import tpu as pltpu


LANE = 128                      # lane width: channel (minor) dims padded to this
CIN_IMG = 8                     # image channels padded 3 -> 8 for the conv1 GEMM K dim
VMEM_LIMIT = 48 * 1024 * 1024   # explicit scoped-VMEM budget (fits v5e/v6e/v7x)

STYLE_LAYERS = ("s1", "s2", "s3")
CONTENT_LAYER = "c"


# ------------------------------ tiling helpers -------------------------------

def _div_tile(n, target):
    """Largest tile <= target that divides n (leading / untiled dims)."""
    if n <= target:
        return n
    for t in range(target, 0, -1):
        if n % t == 0:
            return t
    return n


def _row_tile(n, target):
    """Largest sublane-aligned tile <= target dividing n (fallback: full)."""
    if n <= target:
        return n
    for t in range(target, 7, -1):
        if n % t == 0 and t % 8 == 0:
            return t
    return n


# ------------------------------- Pallas kernels -------------------------------

def _conv3x3_kernel(x_ref, w_ref, b_ref, *out_refs, tile_h, out_w, with_penalty):
    """3x3 'same' conv + bias + ReLU on one band of `tile_h` output rows.

    x_ref : (H+2, W+2, Cin)   spatially padded input, resident in VMEM
    w_ref : (9, Cin, Cpad)    bf16 weight taps (tap index = dy*3 + dx)
    b_ref : (1, Cpad)         f32 bias
    o_ref : (tile_h, W, Cpad) bf16 output band (lane-dense: Cpad == 128)
    pen_ref (optional) : (1, 1) f32 = sum(relu(-x) + relu(x-1)) over the image.

    No im2col is materialized in HBM: the 9 taps are 9 accumulated bf16 GEMMs
    over shifted views of the VMEM-resident input, accumulated in f32.
    """
    if with_penalty:
        o_ref, pen_ref = out_refs
    else:
        (o_ref,) = out_refs

    i = pl.program_id(0)
    cin = x_ref.shape[-1]
    cpad = o_ref.shape[-1]

    if with_penalty:
        # The image is already resident in VMEM -> fuse the pixel-range penalty.
        # Spatial / channel zero-padding contributes exactly 0 to the sum.
        @pl.when(i == 0)
        def _():
            x = x_ref[...].astype(jnp.float32)
            pen = jnp.maximum(-x, 0.0) + jnp.maximum(x - 1.0, 0.0)
            pen_ref[...] = jnp.full((1, 1), jnp.sum(pen), dtype=pen_ref.dtype)

    r0 = i * tile_h
    if tile_h % 8 == 0:
        r0 = pl.multiple_of(r0, 8)

    acc = jnp.zeros((tile_h * out_w, cpad), jnp.float32)
    for dy in range(3):
        for dx in range(3):
            win = x_ref[pl.ds(r0 + dy, tile_h), pl.ds(dx, out_w), :]
            win = win.reshape(tile_h * out_w, cin).astype(jnp.bfloat16)
            acc = acc + jnp.dot(win, w_ref[dy * 3 + dx],
                                preferred_element_type=jnp.float32)
    acc = jnp.maximum(acc + b_ref[...], 0.0)
    o_ref[...] = acc.reshape(tile_h, out_w, cpad).astype(o_ref.dtype)


def _gram_kernel(f_ref, o_ref, *, inv_norm):
    """Accumulate G = F^T F over row tiles of F (HW x C); scale on the last step."""
    k = pl.program_id(0)

    @pl.when(k == 0)
    def _():
        o_ref[...] = jnp.zeros_like(o_ref)

    f = f_ref[...].astype(jnp.float32)
    ft = jnp.transpose(f)                                  # (C, tile): XLU transpose
    o_ref[...] += jnp.dot(ft.astype(jnp.bfloat16), f.astype(jnp.bfloat16),
                          preferred_element_type=jnp.float32)

    @pl.when(k == pl.num_programs(0) - 1)
    def _():
        o_ref[...] = o_ref[...] * inv_norm


def _gram_mse_kernel(f_ref, gt_ref, o_ref, acc_ref, *, inv_norm, inv_nelem):
    """Fused Gram + MSE-vs-target: emits the scalar style loss of one layer."""
    k = pl.program_id(0)

    @pl.when(k == 0)
    def _():
        acc_ref[...] = jnp.zeros_like(acc_ref)

    f = f_ref[...].astype(jnp.float32)
    ft = jnp.transpose(f)
    acc_ref[...] += jnp.dot(ft.astype(jnp.bfloat16), f.astype(jnp.bfloat16),
                            preferred_element_type=jnp.float32)

    @pl.when(k == pl.num_programs(0) - 1)
    def _():
        d = acc_ref[...] * inv_norm - gt_ref[...]
        o_ref[...] = jnp.sum(d * d, keepdims=True) * inv_nelem


def _mse_kernel(a_ref, b_ref, o_ref, *, inv_nelem):
    """Tiled accumulating MSE (content loss): partial sums into a (1,1) accumulator."""
    k = pl.program_id(0)

    @pl.when(k == 0)
    def _():
        o_ref[...] = jnp.zeros_like(o_ref)

    d = a_ref[...].astype(jnp.float32) - b_ref[...].astype(jnp.float32)
    o_ref[...] += jnp.sum(d * d, keepdims=True)

    @pl.when(k == pl.num_programs(0) - 1)
    def _():
        o_ref[...] = o_ref[...] * inv_nelem


# ------------------------------- thin wrappers --------------------------------

def conv3x3_bias_relu(x_hwc, w_packed, b_packed, *, fuse_range_penalty=False):
    """3x3 'same' conv + bias + ReLU (optionally fused with the range penalty)."""
    H, W, Cin = x_hwc.shape
    taps, cin_p, cpad = w_packed.shape
    assert taps == 9 and cin_p == Cin and cpad % LANE == 0

    xpad = jnp.pad(x_hwc, ((1, 1), (1, 1), (0, 0)))
    Hp, Wp = H + 2, W + 2
    tile_h = _div_tile(H, 8)
    grid = (H // tile_h,)

    kernel = functools.partial(_conv3x3_kernel, tile_h=tile_h, out_w=W,
                               with_penalty=fuse_range_penalty)

    feat_shape = jax.ShapeDtypeStruct((H, W, cpad), jnp.bfloat16)
    feat_spec = pl.BlockSpec((tile_h, W, cpad), lambda i: (i, 0, 0))
    in_specs = [
        pl.BlockSpec((Hp, Wp, Cin), lambda i: (0, 0, 0)),   # resident input (+halo)
        pl.BlockSpec((9, Cin, cpad), lambda i: (0, 0, 0)),  # resident weight taps
        pl.BlockSpec((1, cpad), lambda i: (0, 0)),          # resident bias
    ]

    if fuse_range_penalty:
        out_shape = (feat_shape, jax.ShapeDtypeStruct((1, 1), jnp.float32))
        out_specs = (feat_spec, pl.BlockSpec((1, 1), lambda i: (0, 0)))
        # The scalar penalty output is shared by all grid steps -> keep the row
        # axis sequential for this one call.
        dims = ("arbitrary",)
    else:
        out_shape = feat_shape
        out_specs = feat_spec
        dims = ("parallel",)   # disjoint row bands: shard across v7x's 2 TCs

    res = pl.pallas_call(
        kernel,
        out_shape=out_shape,
        grid=grid,
        in_specs=in_specs,
        out_specs=out_specs,
        compiler_params=pltpu.CompilerParams(
            dimension_semantics=dims, vmem_limit_bytes=VMEM_LIMIT),
    )(xpad, w_packed, b_packed)

    if fuse_range_penalty:
        feat, pen = res
        return feat, pen[0, 0]
    return res


def gram_matrix(f_hwc, c_true):
    """Normalized Gram G = F^T F / (C_true * H * W) from (H, W, Cpad) features."""
    H, W, cpad = f_hwc.shape
    hw = H * W
    f = f_hwc.reshape(hw, cpad)          # free row-major collapse, no HBM transpose
    tile = _row_tile(hw, 128)
    return pl.pallas_call(
        functools.partial(_gram_kernel, inv_norm=1.0 / float(c_true * hw)),
        out_shape=jax.ShapeDtypeStruct((cpad, cpad), jnp.float32),
        grid=(hw // tile,),
        in_specs=[pl.BlockSpec((tile, cpad), lambda k: (k, 0))],
        out_specs=pl.BlockSpec((cpad, cpad), lambda k: (0, 0)),
        compiler_params=pltpu.CompilerParams(
            dimension_semantics=("arbitrary",), vmem_limit_bytes=VMEM_LIMIT),
    )(f)


def gram_style_mse(f_hwc, gram_target, c_true):
    """Fused Gram + MSE(G, G_target): scalar style loss for one layer."""
    H, W, cpad = f_hwc.shape
    hw = H * W
    f = f_hwc.reshape(hw, cpad)
    tile = _row_tile(hw, 128)
    out = pl.pallas_call(
        functools.partial(_gram_mse_kernel,
                          inv_norm=1.0 / float(c_true * hw),
                          inv_nelem=1.0 / float(c_true * c_true)),
        out_shape=jax.ShapeDtypeStruct((1, 1), jnp.float32),
        grid=(hw // tile,),
        in_specs=[pl.BlockSpec((tile, cpad), lambda k: (k, 0)),
                  pl.BlockSpec((cpad, cpad), lambda k: (0, 0))],
        out_specs=pl.BlockSpec((1, 1), lambda k: (0, 0)),
        scratch_shapes=[pltpu.VMEM((cpad, cpad), jnp.float32)],
        compiler_params=pltpu.CompilerParams(
            dimension_semantics=("arbitrary",), vmem_limit_bytes=VMEM_LIMIT),
    )(f, gram_target)
    return out[0, 0]


def content_mse(f_hwc, target_hwc, c_true):
    """Mean squared error between feature maps (mean over the true element count)."""
    H, W, cpad = f_hwc.shape
    hw = H * W
    a = f_hwc.reshape(hw, cpad)
    b = target_hwc.reshape(hw, cpad)
    tile = _row_tile(hw, 128)
    out = pl.pallas_call(
        functools.partial(_mse_kernel, inv_nelem=1.0 / float(hw * c_true)),
        out_shape=jax.ShapeDtypeStruct((1, 1), jnp.float32),
        grid=(hw // tile,),
        in_specs=[pl.BlockSpec((tile, cpad), lambda k: (k, 0)),
                  pl.BlockSpec((tile, cpad), lambda k: (k, 0))],
        out_specs=pl.BlockSpec((1, 1), lambda k: (0, 0)),
        compiler_params=pltpu.CompilerParams(
            dimension_semantics=("arbitrary",), vmem_limit_bytes=VMEM_LIMIT),
    )(a, b)
    return out[0, 0]


def maxpool2(x_hwc):
    """2x2 max-pool, stride 2, floor mode (crops odd trailing row/col) -- XLA glue."""
    H, W, C = x_hwc.shape
    H2, W2 = H // 2, W // 2
    x = x_hwc[: H2 * 2, : W2 * 2, :]
    return x.reshape(H2, 2, W2, 2, C).max(axis=(1, 3))


# ---------------------------- VGG-like feature net ----------------------------

def _pack_conv(w_hwio, bias, cin_pad, cout_pad):
    """Pack a (3,3,Cin,Cout) f32 conv into lane-padded bf16 taps + f32 bias."""
    kh, kw, cin, cout = w_hwio.shape
    w = jnp.zeros((kh * kw, cin_pad, cout_pad), jnp.float32)
    w = w.at[:, :cin, :cout].set(w_hwio.reshape(kh * kw, cin, cout))
    b = jnp.zeros((1, cout_pad), jnp.float32).at[0, :cout].set(bias)
    return w.astype(jnp.bfloat16), b


def init_params(key):
    k1, k2, k3 = jax.random.split(key, 3)
    w1 = 0.1 * jax.random.normal(k1, (3, 3, 3, 8), jnp.float32)
    w2 = 0.1 * jax.random.normal(k2, (3, 3, 8, 16), jnp.float32)
    w3 = 0.1 * jax.random.normal(k3, (3, 3, 16, 16), jnp.float32)
    b1 = jnp.zeros((8,), jnp.float32)
    b2 = jnp.zeros((16,), jnp.float32)
    b3 = jnp.zeros((16,), jnp.float32)
    params = {}
    params["w1"], params["b1"] = _pack_conv(w1, b1, CIN_IMG, LANE)
    params["w2"], params["b2"] = _pack_conv(w2, b2, LANE, LANE)
    params["w3"], params["b3"] = _pack_conv(w3, b3, LANE, LANE)
    true_c = {"s1": 8, "s2": 16, "c": 16, "s3": 16}   # unpadded channel counts
    return params, true_c


def get_features(params, x_hwc, *, with_penalty=False):
    """x_hwc: (H, W, 3) f32 image in [0, 1]. Returns ({layer: feature}, penalty)."""
    x = jnp.pad(x_hwc, ((0, 0), (0, 0), (0, CIN_IMG - x_hwc.shape[-1])))
    if with_penalty:
        h, pen = conv3x3_bias_relu(x, params["w1"], params["b1"],
                                   fuse_range_penalty=True)
    else:
        h = conv3x3_bias_relu(x, params["w1"], params["b1"])
        pen = None
    feats = {"s1": h}
    h = maxpool2(h)
    h = conv3x3_bias_relu(h, params["w2"], params["b2"])
    feats["s2"] = h
    feats["c"] = h                      # content layer (analogue of relu4_2)
    h = maxpool2(h)
    h = conv3x3_bias_relu(h, params["w3"], params["b3"])
    feats["s3"] = h
    return feats, pen


# ---------------------------------- NST model ----------------------------------

class NST:
    def __init__(self, style_image, content_image, alpha, beta, gamma,
                 style_weights, params, true_c):
        # images: NCHW float32 in [0, 1]  (ToTensor analogue)
        self.alpha, self.beta, self.gamma = alpha, beta, gamma
        self.style_weights = style_weights
        self.params = params
        self.true_c = true_c

        style_hwc = jnp.transpose(style_image[0], (1, 2, 0))
        content_hwc = jnp.transpose(content_image[0], (1, 2, 0))
        style_feats, _ = get_features(params, style_hwc)
        content_feats, _ = get_features(params, content_hwc)

        self.content_target = content_feats[CONTENT_LAYER]
        self.style_gram_targets = {
            l: gram_matrix(style_feats[l], true_c[l]) for l in STYLE_LAYERS}

        # nn.Parameter(content_image.clone())
        self.output_image = content_image

    def forward(self, output_image):
        x_hwc = jnp.transpose(output_image[0], (1, 2, 0))
        # range penalty is fused into the first conv kernel (image already in VMEM)
        feats, l_err = get_features(self.params, x_hwc, with_penalty=True)

        content_err = content_mse(feats[CONTENT_LAYER], self.content_target,
                                  self.true_c[CONTENT_LAYER])

        style_err = jnp.float32(0.0)
        for layer in STYLE_LAYERS:
            style_err = style_err + self.style_weights[layer] * gram_style_mse(
                feats[layer], self.style_gram_targets[layer], self.true_c[layer])

        return (self.alpha * content_err
                + self.beta * style_err
                + self.gamma * l_err)


# ------------------------------------ main -------------------------------------

if __name__ == "__main__":
    key = jax.random.PRNGKey(0)
    k_style, k_content, k_params = jax.random.split(key, 3)

    # Small stand-ins for the preprocessed (Resize + ToTensor) 1x3xHxW images.
    H = W = 32
    style_image = jax.random.uniform(k_style, (1, 3, H, W), dtype=jnp.float32)
    content_image = jax.random.uniform(k_content, (1, 3, H, W), dtype=jnp.float32)

    params, true_c = init_params(k_params)
    model = NST(
        style_image, content_image,
        alpha=1.0, beta=1e3, gamma=10.0,
        style_weights={"s1": 1.0, "s2": 0.8, "s3": 0.5},
        params=params, true_c=true_c,
    )

    loss = jax.jit(model.forward)(model.output_image)
    jax.block_until_ready(loss)
    assert loss.shape == () and bool(jnp.isfinite(loss))
    print("KERNEL_OK")
</pallas_src>

<mosaic_0001>
module attributes {stable_mosaic.version = 11 : i64} {
  func.func @_conv3x3_kernel(%arg0: i32, %arg1: memref<34x34x8xf32, #tpu.memory_space<vmem>>, %arg2: memref<9x8x128xbf16, #tpu.memory_space<vmem>>, %arg3: memref<1x128xf32, #tpu.memory_space<vmem>>, %arg4: memref<8x32x128xbf16, #tpu.memory_space<vmem>>) attributes {dimension_semantics = [#tpu.dimension_semantics<parallel>], iteration_bounds = array<i64: 4>, scalar_prefetch = 0 : i64, scratch_operands = 0 : i64, tpu.core_type = #tpu.core_type<tc>, window_params = [{pipeline_mode = #tpu.pipeline_mode<synchronous>, transform_indices = @transform_0, window_bounds = array<i64: 34, 34, 8>}, {pipeline_mode = #tpu.pipeline_mode<synchronous>, transform_indices = @transform_1, window_bounds = array<i64: 9, 8, 128>}, {pipeline_mode = #tpu.pipeline_mode<synchronous>, transform_indices = @transform_2, window_bounds = array<i64: 1, 128>}, {transform_indices = @transform_3, window_bounds = array<i64: 8, 32, 128>}]} {
    %c8_i32 = arith.constant 8 : i32
    %0 = arith.muli %arg0, %c8_i32 : i32
    %1 = tpu.assume_multiple %0, 8 : i32
    %cst = arith.constant 0.000000e+00 : f32
    %2 = vector.broadcast %cst : f32 to vector<256x128xf32>
    %c0_i32 = arith.constant 0 : i32
    %3 = arith.addi %1, %c0_i32 : i32
    %4 = arith.index_cast %3 : i32 to index
    %c0 = arith.constant 0 : index
    %c0_0 = arith.constant 0 : index
    %5 = vector.load %arg1[%4, %c0, %c0_0] : memref<34x34x8xf32, #tpu.memory_space<vmem>>, vector<8x32x8xf32>
    %6 = vector.shape_cast %5 : vector<8x32x8xf32> to vector<256x8xf32>
    %7 = arith.truncf %6 : vector<256x8xf32> to vector<256x8xbf16>
    %c0_1 = arith.constant 0 : index
    %c0_2 = arith.constant 0 : index
    %c0_3 = arith.constant 0 : index
    %8 = vector.load %arg2[%c0_1, %c0_2, %c0_3] : memref<9x8x128xbf16, #tpu.memory_space<vmem>>, vector<1x8x128xbf16>
    %9 = vector.shape_cast %8 : vector<1x8x128xbf16> to vector<8x128xbf16>
    %cst_4 = arith.constant dense<0.000000e+00> : vector<256x128xf32>
    %10 = tpu.matmul %7, %9, %cst_4 {dimension_numbers = #tpu.dot_dimension_numbers<[1], [0], [0], [1], [0, 0, 1, 1], [], []>} : vector<256x8xbf16>, vector<8x128xbf16>, vector<256x128xf32> -> vector<256x128xf32>
    %11 = arith.addf %2, %10 : vector<256x128xf32>
    %c0_i32_5 = arith.constant 0 : i32
    %12 = arith.addi %1, %c0_i32_5 : i32
    %13 = arith.index_cast %12 : i32 to index
    %c1 = arith.constant 1 : index
    %c0_6 = arith.constant 0 : index
    %14 = vector.load %arg1[%13, %c1, %c0_6] : memref<34x34x8xf32, #tpu.memory_space<vmem>>, vector<8x32x8xf32>
    %15 = vector.shape_cast %14 : vector<8x32x8xf32> to vector<256x8xf32>
    %16 = arith.truncf %15 : vector<256x8xf32> to vector<256x8xbf16>
    %c1_7 = arith.constant 1 : index
    %c0_8 = arith.constant 0 : index
    %c0_9 = arith.constant 0 : index
    %17 = vector.load %arg2[%c1_7, %c0_8, %c0_9] : memref<9x8x128xbf16, #tpu.memory_space<vmem>>, vector<1x8x128xbf16>
    %18 = vector.shape_cast %17 : vector<1x8x128xbf16> to vector<8x128xbf16>
    %cst_10 = arith.constant dense<0.000000e+00> : vector<256x128xf32>
    %19 = tpu.matmul %16, %18, %cst_10 {dimension_numbers = #tpu.dot_dimension_numbers<[1], [0], [0], [1], [0, 0, 1, 1], [], []>} : vector<256x8xbf16>, vector<8x128xbf16>, vector<256x128xf32> -> vector<256x128xf32>
    %20 = arith.addf %11, %19 : vector<256x128xf32>
    %c0_i32_11 = arith.constant 0 : i32
    %21 = arith.addi %1, %c0_i32_11 : i32
    %22 = arith.index_cast %21 : i32 to index
    %c2 = arith.constant 2 : index
    %c0_12 = arith.constant 0 : index
    %23 = vector.load %arg1[%22, %c2, %c0_12] : memref<34x34x8xf32, #tpu.memory_space<vmem>>, vector<8x32x8xf32>
    %24 = vector.shape_cast %23 : vector<8x32x8xf32> to vector<256x8xf32>
    %25 = arith.truncf %24 : vector<256x8xf32> to vector<256x8xbf16>
    %c2_13 = arith.constant 2 : index
    %c0_14 = arith.constant 0 : index
    %c0_15 = arith.constant 0 : index
    %26 = vector.load %arg2[%c2_13, %c0_14, %c0_15] : memref<9x8x128xbf16, #tpu.memory_space<vmem>>, vector<1x8x128xbf16>
    %27 = vector.shape_cast %26 : vector<1x8x128xbf16> to vector<8x128xbf16>
    %cst_16 = arith.constant dense<0.000000e+00> : vector<256x128xf32>
    %28 = tpu.matmul %25, %27, %cst_16 {dimension_numbers = #tpu.dot_dimension_numbers<[1], [0], [0], [1], [0, 0, 1, 1], [], []>} : vector<256x8xbf16>, vector<8x128xbf16>, vector<256x128xf32> -> vector<256x128xf32>
    %29 = arith.addf %20, %28 : vector<256x128xf32>
    %c1_i32 = arith.constant 1 : i32
    %30 = arith.addi %1, %c1_i32 : i32
    %31 = arith.index_cast %30 : i32 to index
    %c0_17 = arith.constant 0 : index
    %c0_18 = arith.constant 0 : index
    %32 = vector.load %arg1[%31, %c0_17, %c0_18] : memref<34x34x8xf32, #tpu.memory_space<vmem>>, vector<8x32x8xf32>
    %33 = vector.shape_cast %32 : vector<8x32x8xf32> to vector<256x8xf32>
    %34 = arith.truncf %33 : vector<256x8xf32> to vector<256x8xbf16>
    %c3 = arith.constant 3 : index
    %c0_19 = arith.constant 0 : index
    %c0_20 = arith.constant 0 : index
    %35 = vector.load %arg2[%c3, %c0_19, %c0_20] : memref<9x8x128xbf16, #tpu.memory_space<vmem>>, vector<1x8x128xbf16>
    %36 = vector.shape_cast %35 : vector<1x8x128xbf16> to vector<8x128xbf16>
    %cst_21 = arith.constant dense<0.000000e+00> : vector<256x128xf32>
    %37 = tpu.matmul %34, %36, %cst_21 {dimension_numbers = #tpu.dot_dimension_numbers<[1], [0], [0], [1], [0, 0, 1, 1], [], []>} : vector<256x8xbf16>, vector<8x128xbf16>, vector<256x128xf32> -> vector<256x128xf32>
    %38 = arith.addf %29, %37 : vector<256x128xf32>
    %c1_i32_22 = arith.constant 1 : i32
    %39 = arith.addi %1, %c1_i32_22 : i32
    %40 = arith.index_cast %39 : i32 to index
    %c1_23 = arith.constant 1 : index
    %c0_24 = arith.constant 0 : index
    %41 = vector.load %arg1[%40, %c1_23, %c0_24] : memref<34x34x8xf32, #tpu.memory_space<vmem>>, vector<8x32x8xf32>
    %42 = vector.shape_cast %41 : vector<8x32x8xf32> to vector<256x8xf32>
    %43 = arith.truncf %42 : vector<256x8xf32> to vector<256x8xbf16>
    %c4 = arith.constant 4 : index
    %c0_25 = arith.constant 0 : index
    %c0_26 = arith.constant 0 : index
    %44 = vector.load %arg2[%c4, %c0_25, %c0_26] : memref<9x8x128xbf16, #tpu.memory_space<vmem>>, vector<1x8x128xbf16>
    %45 = vector.shape_cast %44 : vector<1x8x128xbf16> to vector<8x128xbf16>
    %cst_27 = arith.constant dense<0.000000e+00> : vector<256x128xf32>
    %46 = tpu.matmul %43, %45, %cst_27 {dimension_numbers = #tpu.dot_dimension_numbers<[1], [0], [0], [1], [0, 0, 1, 1], [], []>} : vector<256x8xbf16>, vector<8x128xbf16>, vector<256x128xf32> -> vector<256x128xf32>
    %47 = arith.addf %38, %46 : vector<256x128xf32>
    %c1_i32_28 = arith.constant 1 : i32
    %48 = arith.addi %1, %c1_i32_28 : i32
    %49 = arith.index_cast %48 : i32 to index
    %c2_29 = arith.constant 2 : index
    %c0_30 = arith.constant 0 : index
    %50 = vector.load %arg1[%49, %c2_29, %c0_30] : memref<34x34x8xf32, #tpu.memory_space<vmem>>, vector<8x32x8xf32>
    %51 = vector.shape_cast %50 : vector<8x32x8xf32> to vector<256x8xf32>
    %52 = arith.truncf %51 : vector<256x8xf32> to vector<256x8xbf16>
    %c5 = arith.constant 5 : index
    %c0_31 = arith.constant 0 : index
    %c0_32 = arith.constant 0 : index
    %53 = vector.load %arg2[%c5, %c0_31, %c0_32] : memref<9x8x128xbf16, #tpu.memory_space<vmem>>, vector<1x8x128xbf16>
    %54 = vector.shape_cast %53 : vector<1x8x128xbf16> to vector<8x128xbf16>
    %cst_33 = arith.constant dense<0.000000e+00> : vector<256x128xf32>
    %55 = tpu.matmul %52, %54, %cst_33 {dimension_numbers = #tpu.dot_dimension_numbers<[1], [0], [0], [1], [0, 0, 1, 1], [], []>} : vector<256x8xbf16>, vector<8x128xbf16>, vector<256x128xf32> -> vector<256x128xf32>
    %56 = arith.addf %47, %55 : vector<256x128xf32>
    %c2_i32 = arith.constant 2 : i32
    %57 = arith.addi %1, %c2_i32 : i32
    %58 = arith.index_cast %57 : i32 to index
    %c0_34 = arith.constant 0 : index
    %c0_35 = arith.constant 0 : index
    %59 = vector.load %arg1[%58, %c0_34, %c0_35] : memref<34x34x8xf32, #tpu.memory_space<vmem>>, vector<8x32x8xf32>
    %60 = vector.shape_cast %59 : vector<8x32x8xf32> to vector<256x8xf32>
    %61 = arith.truncf %60 : vector<256x8xf32> to vector<256x8xbf16>
    %c6 = arith.constant 6 : index
    %c0_36 = arith.constant 0 : index
    %c0_37 = arith.constant 0 : index
    %62 = vector.load %arg2[%c6, %c0_36, %c0_37] : memref<9x8x128xbf16, #tpu.memory_space<vmem>>, vector<1x8x128xbf16>
    %63 = vector.shape_cast %62 : vector<1x8x128xbf16> to vector<8x128xbf16>
    %cst_38 = arith.constant dense<0.000000e+00> : vector<256x128xf32>
    %64 = tpu.matmul %61, %63, %cst_38 {dimension_numbers = #tpu.dot_dimension_numbers<[1], [0], [0], [1], [0, 0, 1, 1], [], []>} : vector<256x8xbf16>, vector<8x128xbf16>, vector<256x128xf32> -> vector<256x128xf32>
    %65 = arith.addf %56, %64 : vector<256x128xf32>
    %c2_i32_39 = arith.constant 2 : i32
    %66 = arith.addi %1, %c2_i32_39 : i32
    %67 = arith.index_cast %66 : i32 to index
    %c1_40 = arith.constant 1 : index
    %c0_41 = arith.constant 0 : index
    %68 = vector.load %arg1[%67, %c1_40, %c0_41] : memref<34x34x8xf32, #tpu.memory_space<vmem>>, vector<8x32x8xf32>
    %69 = vector.shape_cast %68 : vector<8x32x8xf32> to vector<256x8xf32>
    %70 = arith.truncf %69 : vector<256x8xf32> to vector<256x8xbf16>
    %c7 = arith.constant 7 : index
    %c0_42 = arith.constant 0 : index
    %c0_43 = arith.constant 0 : index
    %71 = vector.load %arg2[%c7, %c0_42, %c0_43] : memref<9x8x128xbf16, #tpu.memory_space<vmem>>, vector<1x8x128xbf16>
    %72 = vector.shape_cast %71 : vector<1x8x128xbf16> to vector<8x128xbf16>
    %cst_44 = arith.constant dense<0.000000e+00> : vector<256x128xf32>
    %73 = tpu.matmul %70, %72, %cst_44 {dimension_numbers = #tpu.dot_dimension_numbers<[1], [0], [0], [1], [0, 0, 1, 1], [], []>} : vector<256x8xbf16>, vector<8x128xbf16>, vector<256x128xf32> -> vector<256x128xf32>
    %74 = arith.addf %65, %73 : vector<256x128xf32>
    %c2_i32_45 = arith.constant 2 : i32
    %75 = arith.addi %1, %c2_i32_45 : i32
    %76 = arith.index_cast %75 : i32 to index
    %c2_46 = arith.constant 2 : index
    %c0_47 = arith.constant 0 : index
    %77 = vector.load %arg1[%76, %c2_46, %c0_47] : memref<34x34x8xf32, #tpu.memory_space<vmem>>, vector<8x32x8xf32>
    %78 = vector.shape_cast %77 : vector<8x32x8xf32> to vector<256x8xf32>
    %79 = arith.truncf %78 : vector<256x8xf32> to vector<256x8xbf16>
    %c8 = arith.constant 8 : index
    %c0_48 = arith.constant 0 : index
    %c0_49 = arith.constant 0 : index
    %80 = vector.load %arg2[%c8, %c0_48, %c0_49] : memref<9x8x128xbf16, #tpu.memory_space<vmem>>, vector<1x8x128xbf16>
    %81 = vector.shape_cast %80 : vector<1x8x128xbf16> to vector<8x128xbf16>
    %cst_50 = arith.constant dense<0.000000e+00> : vector<256x128xf32>
    %82 = tpu.matmul %79, %81, %cst_50 {dimension_numbers = #tpu.dot_dimension_numbers<[1], [0], [0], [1], [0, 0, 1, 1], [], []>} : vector<256x8xbf16>, vector<8x128xbf16>, vector<256x128xf32> -> vector<256x128xf32>
    %83 = arith.addf %74, %82 : vector<256x128xf32>
    %c0_51 = arith.constant 0 : index
    %c0_52 = arith.constant 0 : index
    %84 = vector.load %arg3[%c0_51, %c0_52] : memref<1x128xf32, #tpu.memory_space<vmem>>, vector<1x128xf32>
    %85 = vector.broadcast %84 : vector<1x128xf32> to vector<256x128xf32>
    %86 = arith.addf %83, %85 : vector<256x128xf32>
    %cst_53 = arith.constant 0.000000e+00 : f32
    %87 = vector.broadcast %cst_53 : f32 to vector<256x128xf32>
    %88 = arith.maximumf %86, %87 : vector<256x128xf32>
    %89 = vector.shape_cast %88 : vector<256x128xf32> to vector<8x32x128xf32>
    %90 = arith.truncf %89 : vector<8x32x128xf32> to vector<8x32x128xbf16>
    %c0_54 = arith.constant 0 : index
    %c0_55 = arith.constant 0 : index
    %c0_56 = arith.constant 0 : index
    %91 = vector.load %arg4[%c0_54, %c0_55, %c0_56] : memref<8x32x128xbf16, #tpu.memory_space<vmem>>, vector<8x32x128xbf16>
    tpu.vector_store %arg4[%c0_54, %c0_55, %c0_56], %90 {strides = array<i32>} : memref<8x32x128xbf16, #tpu.memory_space<vmem>>, vector<8x32x128xbf16>,
    return
  }
  func.func @transform_0(%arg0: i32) -> (i32, i32, i32) {
    %c0_i32 = arith.constant 0 : i32
    %c0_i32_0 = arith.constant 0 : i32
    %c0_i32_1 = arith.constant 0 : i32
    %c0_i32_2 = arith.constant 0 : i32
    return %c0_i32, %c0_i32_0, %c0_i32_1 : i32, i32, i32
  }
  func.func @transform_1(%arg0: i32) -> (i32, i32, i32) {
    %c0_i32 = arith.constant 0 : i32
    %c0_i32_0 = arith.constant 0 : i32
    %c0_i32_1 = arith.constant 0 : i32
    %c0_i32_2 = arith.constant 0 : i32
    return %c0_i32, %c0_i32_0, %c0_i32_1 : i32, i32, i32
  }
  func.func @transform_2(%arg0: i32) -> (i32, i32) {
    %c0_i32 = arith.constant 0 : i32
    %c0_i32_0 = arith.constant 0 : i32
    %c0_i32_1 = arith.constant 0 : i32
    return %c0_i32, %c0_i32_0 : i32, i32
  }
  func.func @transform_3(%arg0: i32) -> (i32, i32, i32) {
    %c0_i32 = arith.constant 0 : i32
    %c0_i32_0 = arith.constant 0 : i32
    %c0_i32_1 = arith.constant 0 : i32
    return %arg0, %c0_i32, %c0_i32_0 : i32, i32, i32
  }
}

</mosaic_0001>

<bundles_post_ra>
// kernel: tpu_custom_call.1
= control target key start
LH: loop header
LB: loop body
LE: loop exit
PB: predicated region body
PF: predicated region fallthrough
CT: control target
= control target key end

     0   :  { %8 = vsyncpa [#allocation3], 0  ;;  %s3752_s0 = inlined_call_operand.vmem [shape: f32[34,34,8], index: 0, kind: input, shape index: {}]   ;;  %s3753_s1 = inlined_call_operand.vmem [shape: bf16[9,8,128], index: 1, kind: input, shape index: {}]   ;;  %s3754_s2 = inlined_call_operand.vmem [shape: f32[1,128], index: 2, kind: input, shape index: {}]   ;;  %s3755_s3 = inlined_call_operand.hbm [shape: bf16[32,32,128], index: 3, kind: output, shape index: {}]  }
   0x1   :  { %10 = vsyncpa [#allocation3 + $0x1], 0  ;;  %s2892_s12 = smov 0   ;;  %s2894_s13 = smov 0  }
   0x2   :  { %s2896_s14 = smov 0   ;;  %s2898_s15 = smov 0  }
   0x3 LB: > { %s2913_s16 = sadd.s32 4294967295, %s2868_s15   ;;  %s2304_s17 = sadd.s32 4294967294, %s2868_s15   ;;  %s2868_s15 = sphi %s2898_s15, %s3795_s15   ;;  %s2864_s14 = sphi %s2896_s14, %s3794_s14   ;;  %s2860_s13 = sphi %s2894_s13, %s3793_s13   ;;  %s2856_s12 = sphi %s2892_s12, %s3792_s12  }
   0x4   : > { %s2917_s18 = sadd.s32 1, %s2868_s15   ;;  %s86_s19 = sadd.s32 1, %s2864_s14 }
   0x5   : > { %s83_s20 = ssub.s32 %s2868_s15, %s2917_s18  ;;  %p96_p0 = scmp.ne.s32.totalorder %s2864_s14, %s2860_s13 }
   0x6   : > { %p84_p1 = scmp.eq.s32.totalorder %s83_s20, 0  ;;  %p97_p2 = scmp.eq.s32.totalorder %s2913_s16, 3 }
   0x7   : > { %p102_p3 = scmp.ne.s32.totalorder %s2860_s13, %s2856_s12  ;;  %p103_p4 = scmp.eq.s32.totalorder %s2304_s17, 3 }
   0x8   : > { %s2928_s21 = scalar_select %p84_p1, %s2864_s14, %s86_s19  }
   0x9   : > { %p2930_p5 = por %p97_p2, %p96_p0  ;;  %p2934_p6 = por %p103_p4, %p102_p3 }
   0xa   : > { %p2306_p7 = scmp.ge.s32.totalorder %s2868_s15, 1  ;;  %p130_p8 = scmp.lt.s32.totalorder %s2868_s15, 5 }
   0xc   : > { %p131_p9 = pnand %p2306_p7, %p130_p8 }
   0xe   : > { %134 = sbr.rel (%p131_p9) target bundleno = 743 (0x2e7), region = 32 }
  0x13   : > { %v2310_v0 = vld [vmem:[%s3753_s1 + $0x4] sm:$0xf]  ;;  %vm302_vm0 = vcmask 1043456   ;;  %s2309_s26 = smul.u32 320, %s2913_s16  ;;  %v2343_v2 = vld [vmem:[%s3753_s1 + $0x8] sm:$0xf] }
  0x14   : > { %v304_v1 = vsel %vm302_vm0, %v2310_v0, 0  ;;  %v2394_v3 = vld [vmem:[%s3753_s1 + $0xc] sm:$0xf]  ;;  %v634_v4 = vsel %vm302_vm0, %v2343_v2, 0  ;;  %v202_v6 = vld [vmem:[%s3753_s1] sm:$0xf] }
  0x15   : > { %2761 = vmatpush.bf16.msra.mxu1 %v304_v1  ;;  %2762 = vmatpush.bf16.msra.mxu2 %v304_v1  ;;  %s2954_s6 = scalar_lea.vmem %s3752_s0, %s2309_s26  ;;  %v859_v5 = vsel %vm302_vm0, %v2394_v3, 0  ;;  %v2443_v7 = vld [vmem:[%s3753_s1 + $0x10] sm:$0xf]  ;;  %vm253_vm1 = vcmask 64512   ;;  %v444_v11 = vsel %vm302_vm0, %v202_v6, 0  ;;  %s146_s30 = sand.u32 1, %s2860_s13  }
  0x16   : > { %2763 = vmatpush.bf16.msra.mxu3 %v304_v1  ;;  %313 = vmatpush.bf16.msra.mxu0 %v304_v1  ;;  %v211_v8 = vld [vmem:[%s2954_s6 + $0x51] sm:$0xff]  ;;  %v212_v9 = vld [vmem:[%s2954_s6 + $0x59] sm:$0xff]  ;;  %v219_v10 = vld [vmem:[%s2954_s6 + $0xa1] sm:$0xff]  ;;  %v1081_v12 = vsel %vm302_vm0, %v2443_v7, 0  ;;  %s2307_s4 = sshll.u32 %s146_s30, 7  ;;  %s2826_s25 = scalar_lea.hbm %s3755_s3, 512 }
  0x17   : > { %v2969_v13 = vpack.c.bf16 %v212_v9, %v211_v8  ;;  %v220_v14 = vld [vmem:[%s2954_s6 + $0xa9] sm:$0xff]  ;;  %v227_v15 = vld [vmem:[%s2954_s6 + $0xf1] sm:$0xff]  ;;  %v228_v16 = vld [vmem:[%s2954_s6 + $0xf9] sm:$0xff]  ;;  %s3577_s5 = scalar_lea.vmem [#allocation2], %s2307_s4 }
  0x18   : > { %v2974_v17 = vpack.c.bf16 %v220_v14, %v219_v10  ;;  %v2976_v18 = vpack.c.bf16 %v228_v16, %v227_v15  ;;  %v203_v19 = vld [vmem:[%s2954_s6 + $0x1] sm:$0xff]  ;;  %v204_v20 = vld [vmem:[%s2954_s6 + $0x9] sm:$0xff]  ;;  %v221_v24 = vld [vmem:[%s2954_s6 + $0xb1] sm:$0xff]  ;;  %s2241_s10 = sshll.u32 %s3577_s5, 4  ;;  %s2242_s10 = int_to_ptr.vmem [resolvable:$true] %s2241_s10 }
  0x19   : > { %643 = vmatpush.bf16.msrb.mxu2 %v634_v4  ;;  %453 = vmatpush.bf16.msrb.mxu1 %v444_v11  ;;  %v235_v21 = vpack.c.bf16 %v204_v20, %v203_v19  ;;  %v213_v22 = vld [vmem:[%s2954_s6 + $0x61] sm:$0xff]  ;;  %v214_v23 = vld [vmem:[%s2954_s6 + $0x69] sm:$0xff]  ;;  %v222_v25 = vld [vmem:[%s2954_s6 + $0xb9] sm:$0xff] }
  0x1a   : > { %868 = vmatpush.bf16.msrb.mxu3 %v859_v5  ;;  %1090 = vmatpush.bf16.msrb.mxu0 %v1081_v12  ;;  %v229_v26 = vld [vmem:[%s2954_s6 + $0x101] sm:$0xff]  ;;  %v230_v27 = vld [vmem:[%s2954_s6 + $0x109] sm:$0xff]  ;;  %v205_v28 = vld [vmem:[%s2954_s6 + $0x11] sm:$0xff]  ;;  %v2995_v30 = vpack.c.bf16 %v214_v23, %v213_v22  ;;  %v2997_v31 = vpack.c.bf16 %v222_v25, %v221_v24 }
  0x1b   : > { %2315 = vmatmul.msk.bf16.vlgmr.msra.gmra.mxu1 %vm253_vm1, %v2969_v13  ;;  %2319 = vmatmul.msk.bf16.vlgmr.msra.gmra.mxu2 %vm253_vm1, %v2974_v17  ;;  %v206_v29 = vld [vmem:[%s2954_s6 + $0x19] sm:$0xff]  ;;  %v2999_v32 = vpack.c.bf16 %v230_v27, %v229_v26  ;;  %v216_v35 = vld [vmem:[%s2954_s6 + $0x81] sm:$0xff]  ;;  %v223_v36 = vld [vmem:[%s2954_s6 + $0xc9] sm:$0xff] }
  0x1c   : > { %2323 = vmatmul.msk.bf16.vlgmr.msra.gmra.mxu3 %vm253_vm1, %v2976_v18  ;;  %2311 = vmatmul.msk.bf16.vlgmr.msra.gmra.mxu0 %vm253_vm1, %v235_v21  ;;  %v236_v33 = vpack.c.bf16 %v206_v29, %v205_v28  ;;  %v215_v34 = vld [vmem:[%s2954_s6 + $0x79] sm:$0xff]  ;;  %v224_v37 = vld [vmem:[%s2954_s6 + $0xd1] sm:$0xff]  ;;  %v232_v39 = vld [vmem:[%s2954_s6 + $0x121] sm:$0xff] }
  0x1d   : > { %v231_v38 = vld [vmem:[%s2954_s6 + $0x119] sm:$0xff]  ;;  %v207_v40 = vld [vmem:[%s2954_s6 + $0x29] sm:$0xff]  ;;  %v208_v41 = vld [vmem:[%s2954_s6 + $0x31] sm:$0xff]  ;;  %v3016_v42 = vpack.c.bf16 %v216_v35, %v215_v34  ;;  %v3018_v43 = vpack.c.bf16 %v224_v37, %v223_v36 }
  0x1e   : > { %v3020_v44 = vpack.c.bf16 %v232_v39, %v231_v38  ;;  %v237_v45 = vpack.c.bf16 %v208_v41, %v207_v40  ;;  %v2543_v46 = vld [vmem:[%s3753_s1 + $0x18] sm:$0xf]  ;;  %v2592_v48 = vld [vmem:[%s3753_s1 + $0x1c] sm:$0xf]  ;;  %v2492_v49 = vld [vmem:[%s3753_s1 + $0x14] sm:$0xf] }
  0x1f   : > { %v1528_v47 = vsel %vm302_vm0, %v2543_v46, 0  ;;  %v1750_v50 = vsel %vm302_vm0, %v2592_v48, 0  ;;  %v1303_v51 = vsel %vm302_vm0, %v2492_v49, 0  ;;  %v2641_v52 = vld [vmem:[%s3753_s1 + $0x20] sm:$0xf]  ;;  %v217_v54 = vld [vmem:[%s2954_s6 + $0x89] sm:$0xff] }
  0x20   : > { %1537 = vmatpush.bf16.msra.mxu2 %v1528_v47  ;;  %1759 = vmatpush.bf16.msra.mxu3 %v1750_v50  ;;  %v1972_v53 = vsel %vm302_vm0, %v2641_v52, 0  ;;  %v218_v55 = vld [vmem:[%s2954_s6 + $0x91] sm:$0xff]  ;;  %v225_v56 = vld [vmem:[%s2954_s6 + $0xd9] sm:$0xff]  ;;  %v226_v57 = vld [vmem:[%s2954_s6 + $0xe1] sm:$0xff] }
  0x21   : > { %1312 = vmatpush.bf16.msra.mxu1 %v1303_v51  ;;  %1981 = vmatpush.bf16.msra.mxu0 %v1972_v53  ;;  %v233_v58 = vld [vmem:[%s2954_s6 + $0x129] sm:$0xff]  ;;  %v234_v59 = vld [vmem:[%s2954_s6 + $0x131] sm:$0xff]  ;;  %v209_v60 = vld [vmem:[%s2954_s6 + $0x39] sm:$0xff]  ;;  %v3053_v62 = vpack.c.bf16 %v218_v55, %v217_v54  ;;  %v3055_v63 = vpack.c.bf16 %v226_v57, %v225_v56 }
  0x22   : > { %v210_v61 = vld [vmem:[%s2954_s6 + $0x41] sm:$0xff]  ;;  %v3057_v0 = vpack.c.bf16 %v234_v59, %v233_v58  ;;  %v536_v5 = vld [vmem:[%s2954_s6 + $0xa] sm:$0xff]  ;;  %v157_v12 = vld [vmem:[%s2954_s6 + $0x18] sm:$0xff] }
  0x23   : > { %v238_v1 = vpack.c.bf16 %v210_v61, %v209_v60  ;;  %v154_v2 = vld [vmem:[%s2954_s6] sm:$0xff]  ;;  %v155_v3 = vld [vmem:[%s2954_s6 + $0x8] sm:$0xff]  ;;  %v2363_v7 = vld [vmem:[%s2954_s6 + $0x30] sm:$0xff] }
  0x24   : > { %v535_v4 = vld [vmem:[%s2954_s6 + $0x2] sm:$0xff]  ;;  %v186_v8 = vpack.c.bf16 %v155_v3, %v154_v2  ;;  %v156_v11 = vld [vmem:[%s2954_s6 + $0x10] sm:$0xff]  ;;  %v538_v15 = vld [vmem:[%s2954_s6 + $0x1a] sm:$0xff] }
  0x25   : > { %v2362_v6 = vld [vmem:[%s2954_s6 + $0x28] sm:$0xff]  ;;  %v567_v9 = vpack.c.bf16 %v536_v5, %v535_v4  ;;  %v537_v14 = vld [vmem:[%s2954_s6 + $0x12] sm:$0xff]  ;;  %v2365_v19 = vld [vmem:[%s2954_s6 + $0x40] sm:$0xff]  ;;  %v187_v20 = vpack.c.bf16 %v157_v12, %v156_v11 }
  0x26   : > { %v792_v10 = vpack.c.bf16 %v2363_v7, %v2362_v6  ;;  %v2364_v16 = vld [vmem:[%s2954_s6 + $0x38] sm:$0xff]  ;;  %v568_v21 = vpack.c.bf16 %v538_v15, %v537_v14  ;;  %v539_v23 = vld [vmem:[%s2954_s6 + $0x2a] sm:$0xff]  ;;  %v2368_v34 = vld [vmem:[%s2954_s6 + $0x60] sm:$0xff] }
  0x27   : > { %v793_v22 = vpack.c.bf16 %v2365_v19, %v2364_v16  ;;  %v540_v24 = vld [vmem:[%s2954_s6 + $0x32] sm:$0xff]  ;;  %v541_v29 = vld [vmem:[%s2954_s6 + $0x3a] sm:$0xff]  ;;  %v2369_v35 = vld [vmem:[%s2954_s6 + $0x68] sm:$0xff] }
  0x28   : > { %v2366_v25 = vld [vmem:[%s2954_s6 + $0x50] sm:$0xff]  ;;  %v2367_v26 = vld [vmem:[%s2954_s6 + $0x58] sm:$0xff]  ;;  %v3090_v27 = vpack.c.bf16 %v540_v24, %v539_v23  ;;  %v3107_v37 = vpack.c.bf16 %v2369_v35, %v2368_v34  ;;  %v2371_v41 = vld [vmem:[%s2954_s6 + $0x80] sm:$0xff] }
  0x29   : > { %v3092_v28 = vpack.c.bf16 %v2367_v26, %v2366_v25  ;;  %v543_v38 = vld [vmem:[%s2954_s6 + $0x52] sm:$0xff]  ;;  %v544_v39 = vld [vmem:[%s2954_s6 + $0x5a] sm:$0xff]  ;;  %v545_v53 = vld [vmem:[%s2954_s6 + $0x62] sm:$0xff] }
  0x2a   : > { %v2370_v40 = vld [vmem:[%s2954_s6 + $0x78] sm:$0xff]  ;;  %v3122_v46 = vpack.c.bf16 %v544_v39, %v543_v38  ;;  %v546_v54 = vld [vmem:[%s2954_s6 + $0x6a] sm:$0xff]  ;;  %v548_v6 = vld [vmem:[%s2954_s6 + $0x82] sm:$0xff] }
  0x2b   : > { %2316 = vmatmul.msk.bf16.gmra.mxu1 %vm253_vm1, %v2995_v30  ;;  %2320 = vmatmul.msk.bf16.gmra.mxu2 %vm253_vm1, %v2997_v31  ;;  %v3124_v47 = vpack.c.bf16 %v2371_v41, %v2370_v40  ;;  %v2372_v55 = vld [vmem:[%s2954_s6 + $0x88] sm:$0xff]  ;;  %v2373_v56 = vld [vmem:[%s2954_s6 + $0x90] sm:$0xff]  ;;  %v3154_v59 = vpack.c.bf16 %v546_v54, %v545_v53  ;;  %v547_v5 = vld [vmem:[%s2954_s6 + $0x7a] sm:$0xff] }
  0x2c   : > { %2324 = vmatmul.msk.bf16.gmra.mxu3 %vm253_vm1, %v2999_v32  ;;  %2312 = vmatmul.msk.bf16.gmra.mxu0 %vm253_vm1, %v236_v33  ;;  %v542_v33 = vld [vmem:[%s2954_s6 + $0x42] sm:$0xff]  ;;  %v3156_v60 = vpack.c.bf16 %v2373_v56, %v2372_v55  ;;  %v3186_v11 = vpack.c.bf16 %v548_v6, %v547_v5  ;;  %v2376_v23 = vld [vmem:[%s2954_s6 + $0xb0] sm:$0xff]  ;;  %v2377_v24 = vld [vmem:[%s2954_s6 + $0xb8] sm:$0xff] }
  0x2d   : > { %v3105_v36 = vpack.c.bf16 %v542_v33, %v541_v29  ;;  %v2374_v7 = vld [vmem:[%s2954_s6 + $0xa0] sm:$0xff]  ;;  %v3220_v33 = vpack.c.bf16 %v2377_v24, %v2376_v23  ;;  %v552_v53 = vld [vmem:[%s2954_s6 + $0xaa] sm:$0xff] }
  0x2e   : > { %v551_v41 = vld [vmem:[%s2954_s6 + $0xa2] sm:$0xff]  ;;  %v2379_v55 = vld [vmem:[%s2954_s6 + $0xd0] sm:$0xff] }
  0x2f   : > { %v2378_v54 = vld [vmem:[%s2954_s6 + $0xc8] sm:$0xff] }
  0x3b   : > { %2317 = vmatmul.msk.bf16.gmra.mxu1 %vm253_vm1, %v3016_v42  ;;  %2321 = vmatmul.msk.bf16.gmra.mxu2 %vm253_vm1, %v3018_v43 }
  0x3c   : > { %2325 = vmatmul.msk.bf16.gmra.mxu3 %vm253_vm1, %v3020_v44  ;;  %2313 = vmatmul.msk.bf16.gmra.mxu0 %vm253_vm1, %v237_v45 }
  0x4b   : > { %2318 = vmatmul.msk.bf16.gmra.mxu1 %vm253_vm1, %v3053_v62  ;;  %2322 = vmatmul.msk.bf16.gmra.mxu2 %vm253_vm1, %v3055_v63 }
  0x4c   : > { %2326 = vmatmul.msk.bf16.gmra.mxu3 %vm253_vm1, %v3057_v0  ;;  %2314 = vmatmul.msk.bf16.gmra.mxu0 %vm253_vm1, %v238_v1 }
  0x5b   : > { %2327 = vmatmul.msk.bf16.vlgmr.msrb.gmra.mxu1 %vm253_vm1, %v186_v8  ;;  %2344 = vmatmul.msk.bf16.vlgmr.msrb.gmra.mxu2 %vm253_vm1, %v567_v9  ;;  %v2375_v8 = vld [vmem:[%s2954_s6 + $0xa8] sm:$0xff] }
  0x5c   : > { %2395 = vmatmul.msk.bf16.vlgmr.msrb.gmra.mxu3 %vm253_vm1, %v792_v10  ;;  %2444 = vmatmul.msk.bf16.vlgmr.msrb.gmra.mxu0 %vm253_vm1, %v237_v45  ;;  %v3188_v12 = vpack.c.bf16 %v2375_v8, %v2374_v7  ;;  %v3248_v7 = vpack.c.bf16 %v552_v53, %v551_v41 }
  0x6b   : > { %2328 = vmatmul.msk.bf16.gmra.mxu1 %vm253_vm1, %v187_v20  ;;  %2345 = vmatmul.msk.bf16.gmra.mxu2 %vm253_vm1, %v568_v21  ;;  %v549_v21 = vld [vmem:[%s2954_s6 + $0x8a] sm:$0xff] }
  0x6c   : > { %2396 = vmatmul.msk.bf16.gmra.mxu3 %vm253_vm1, %v793_v22  ;;  %2445 = vmatmul.msk.bf16.gmra.mxu0 %vm253_vm1, %v238_v1 }
  0x7b   : > { %2329 = vmatmul.msk.bf16.gmra.mxu1 %vm253_vm1, %v792_v10  ;;  %2346 = vmatmul.msk.bf16.gmra.mxu2 %vm253_vm1, %v3090_v27 }
  0x7c   : > { %2397 = vmatmul.msk.bf16.gmra.mxu3 %vm253_vm1, %v3092_v28  ;;  %2446 = vmatmul.msk.bf16.gmra.mxu0 %vm253_vm1, %v2969_v13 }
  0x8b   : > { %2330 = vmatmul.msk.bf16.gmra.mxu1 %vm253_vm1, %v793_v22  ;;  %2347 = vmatmul.msk.bf16.gmra.mxu2 %vm253_vm1, %v3105_v36  ;;  %v550_v22 = vld [vmem:[%s2954_s6 + $0x92] sm:$0xff] }
  0x8c   : > { %2398 = vmatmul.msk.bf16.gmra.mxu3 %vm253_vm1, %v3107_v37  ;;  %2447 = vmatmul.msk.bf16.gmra.mxu0 %vm253_vm1, %v2995_v30  ;;  %v3218_v29 = vpack.c.bf16 %v550_v22, %v549_v21 }
  0x98   : > { %v3120_v45 = vpop.f32.mrf.mxu1 }
  0x99   : > { %v3126_v48 = vpop.f32.mrf.mxu0 }
  0x9b   : > { %2331 = vmatmul.msk.bf16.gmra.mxu1 %vm253_vm1, %v3092_v28  ;;  %2348 = vmatmul.msk.bf16.gmra.mxu2 %vm253_vm1, %v3122_v46 }
  0x9c   : > { %2399 = vmatmul.msk.bf16.gmra.mxu3 %vm253_vm1, %v3124_v47  ;;  %2448 = vmatmul.msk.bf16.gmra.mxu0 %vm253_vm1, %v3016_v42 }
  0x9e   : > { %v3136_v49 = vpop.f32.mrf.mxu2 }
  0x9f   : > { %v3138_v50 = vpop.f32.mrf.mxu3 }
  0xa0   : > { %3758 = vst [vmem:[#allocation5_spill] sm:$0xff] %v3138_v50  ;;  %v3140_v51 = vpop.f32.mrf.mxu1 }
  0xa1   : > { %v3142_v52 = vpop.f32.mrf.mxu0 }
  0xa6   : > { %v3148_v57 = vpop.f32.mrf.mxu2 }
  0xa7   : > { %v3150_v58 = vpop.f32.mrf.mxu3 }
  0xa8   : > { %3759 = vst [vmem:[#allocation6_spill] sm:$0xff] %v3150_v58  ;;  %v3152_v42 = vpop.f32.mrf.mxu1 }
  0xa9   : > { %v3158_v61 = vpop.f32.mrf.mxu0 }
  0xab   : > { %2332 = vmatmul.msk.bf16.gmra.mxu1 %vm253_vm1, %v3107_v37  ;;  %2349 = vmatmul.msk.bf16.gmra.mxu2 %vm253_vm1, %v3154_v59 }
  0xac   : > { %2400 = vmatmul.msk.bf16.gmra.mxu3 %vm253_vm1, %v3156_v60  ;;  %2449 = vmatmul.msk.bf16.gmra.mxu0 %vm253_vm1, %v3053_v62 }
  0xae   : > { %v3168_v1 = vpop.f32.mrf.mxu2 }
  0xaf   : > { %v3170_v2 = vpop.f32.mrf.mxu3 }
  0xb0   : > { %3760 = vst [vmem:[#allocation7_spill] sm:$0xff] %v3170_v2  ;;  %v3172_v3 = vpop.f32.mrf.mxu1 }
  0xb1   : > { %v3174_v4 = vpop.f32.mrf.mxu0 }
  0xb6   : > { %v3180_v9 = vpop.f32.mrf.mxu2 }
  0xb7   : > { %v3182_v10 = vpop.f32.mrf.mxu3 }
  0xb8   : > { %3761 = vst [vmem:[#allocation8_spill] sm:$0xff] %v3182_v10  ;;  %v3184_v62 = vpop.f32.mrf.mxu1 }
  0xb9   : > { %v3190_v14 = vpop.f32.mrf.mxu0 }
  0xbb   : > { %2333 = vmatmul.msk.bf16.gmra.mxu1 %vm253_vm1, %v3124_v47  ;;  %2350 = vmatmul.msk.bf16.gmra.mxu2 %vm253_vm1, %v3186_v11 }
  0xbc   : > { %2401 = vmatmul.msk.bf16.gmra.mxu3 %vm253_vm1, %v3188_v12  ;;  %2450 = vmatmul.msk.bf16.gmra.mxu0 %vm253_vm1, %v2974_v17 }
  0xbe   : > { %v3200_v15 = vpop.f32.mrf.mxu2 }
  0xbf   : > { %v3202_v16 = vpop.f32.mrf.mxu3 }
  0xc0   : > { %3762 = vst [vmem:[#allocation9_spill] sm:$0xff] %v3202_v16  ;;  %v3204_v19 = vpop.f32.mrf.mxu1 }
  0xc1   : > { %v3206_v20 = vpop.f32.mrf.mxu0 }
  0xc6   : > { %v3212_v25 = vpop.f32.mrf.mxu2 }
  0xc7   : > { %v3214_v26 = vpop.f32.mrf.mxu3 }
  0xc8   : > { %3763 = vst [vmem:[#allocation10_spill] sm:$0xff] %v3214_v26  ;;  %v3216_v17 = vpop.f32.mrf.mxu1  ;;  %v2381_v26 = vld [vmem:[%s2954_s6 + $0xe0] sm:$0xff] }
  0xc9   : > { %v3222_v34 = vpop.f32.mrf.mxu0 }
  0xcb   : > { %2334 = vmatmul.msk.bf16.gmra.mxu1 %vm253_vm1, %v3156_v60  ;;  %2351 = vmatmul.msk.bf16.gmra.mxu2 %vm253_vm1, %v3218_v29 }
  0xcc   : > { %2402 = vmatmul.msk.bf16.gmra.mxu3 %vm253_vm1, %v3220_v33  ;;  %2451 = vmatmul.msk.bf16.gmra.mxu0 %vm253_vm1, %v2997_v31  ;;  %v3250_v31 = vpack.c.bf16 %v2379_v55, %v2378_v54  ;;  %v553_v55 = vld [vmem:[%s2954_s6 + $0xb2] sm:$0xff] }
  0xce   : > { %v3232_v35 = vpop.f32.mrf.mxu2 }
  0xcf   : > { %v3234_v38 = vpop.f32.mrf.mxu3 }
  0xd0   : > { %3764 = vst [vmem:[#allocation11_spill] sm:$0xff] %v3234_v38  ;;  %v3236_v39 = vpop.f32.mrf.mxu1  ;;  %v2380_v38 = vld [vmem:[%s2954_s6 + $0xd8] sm:$0xff] }
  0xd1   : > { %v3238_v40 = vpop.f32.mrf.mxu0 }
  0xd6   : > { %v3244_v56 = vpop.f32.mrf.mxu2 }
  0xd7   : > { %v3246_v5 = vpop.f32.mrf.mxu3 }
  0xd8   : > { %3765 = vst [vmem:[#allocation12_spill] sm:$0xff] %v3246_v5  ;;  %v455_v6 = vpop.f32.mrf.mxu1  ;;  %v554_v5 = vld [vmem:[%s2954_s6 + $0xba] sm:$0xff] }
  0xd9   : > { %v456_v8 = vadd.f32 %v455_v6, %v3126_v48  ;;  %v1092_v21 = vpop.f32.mrf.mxu0  ;;  %v3268_v50 = vpack.c.bf16 %v554_v5, %v553_v55 }
  0xdb   : > { %2335 = vmatmul.msk.bf16.gmra.mxu1 %vm253_vm1, %v3188_v12  ;;  %2352 = vmatmul.msk.bf16.gmra.mxu2 %vm253_vm1, %v3248_v7 }
  0xdc   : > { %2403 = vmatmul.msk.bf16.gmra.mxu3 %vm253_vm1, %v3250_v31  ;;  %2452 = vmatmul.msk.bf16.gmra.mxu0 %vm253_vm1, %v3018_v43  ;;  %v3270_v43 = vpack.c.bf16 %v2381_v26, %v2380_v38 }
  0xde   : > { %v645_v22 = vpop.f32.mrf.mxu2 }
  0xdf   : > { %v870_v23 = vpop.f32.mrf.mxu3  ;;  %v725_v24 = vadd.f32 %v645_v22, %v456_v8 }
  0xe0   : > { %v457_v41 = vpop.f32.mrf.mxu1 }
  0xe1   : > { %v458_v48 = vadd.f32 %v457_v41, %v3142_v52  ;;  %v950_v53 = vadd.f32 %v870_v23, %v725_v24  ;;  %v1094_v54 = vpop.f32.mrf.mxu0  ;;  %v556_v24 = vld [vmem:[%s2954_s6 + $0xd2] sm:$0xff] }
  0xe2   : > { %v2382_v41 = vld [vmem:[%s2954_s6 + $0xf0] sm:$0xff] }
  0xe3   : > { %v3263_v6 = vadd.f32 %v1092_v21, %v950_v53  ;;  %v555_v21 = vld [vmem:[%s2954_s6 + $0xca] sm:$0xff] }
  0xe6   : > { %v647_v16 = vpop.f32.mrf.mxu2 }
  0xe7   : > { %v872_v10 = vpop.f32.mrf.mxu3  ;;  %v726_v2 = vadd.f32 %v647_v16, %v458_v48  ;;  %v2383_v48 = vld [vmem:[%s2954_s6 + $0xf8] sm:$0xff] }
  0xe8   : > { %v460_v58 = vpop.f32.mrf.mxu1 }
  0xe9   : > { %v461_v8 = vadd.f32 %v460_v58, %v3158_v61  ;;  %v951_v52 = vadd.f32 %v872_v10, %v726_v2  ;;  %v1097_v22 = vpop.f32.mrf.mxu0 }
  0xeb   : > { %2336 = vmatmul.msk.bf16.gmra.mxu1 %vm253_vm1, %v3220_v33  ;;  %2353 = vmatmul.msk.bf16.gmra.mxu2 %vm253_vm1, %v3268_v50  ;;  %v3279_v16 = vadd.f32 %v1094_v54, %v951_v52 }
  0xec   : > { %2404 = vmatmul.msk.bf16.gmra.mxu3 %vm253_vm1, %v3270_v43  ;;  %2453 = vmatmul.msk.bf16.gmra.mxu0 %vm253_vm1, %v3055_v63  ;;  %v3292_v63 = vpack.c.bf16 %v2383_v48, %v2382_v41  ;;  %v558_v48 = vld [vmem:[%s2954_s6 + $0xe2] sm:$0xff] }
  0xed   : > { %3766 = vst [vmem:[#allocation13_spill] sm:$0xff] %v3279_v16  ;;  %v3290_v16 = vpack.c.bf16 %v556_v24, %v555_v21  ;;  %v557_v24 = vld [vmem:[%s2954_s6 + $0xda] sm:$0xff] }
  0xee   : > { %v650_v58 = vpop.f32.mrf.mxu2 }
  0xef   : > { %v875_v61 = vpop.f32.mrf.mxu3  ;;  %v727_v2 = vadd.f32 %v650_v58, %v461_v8 }
  0xf0   : > { %v462_v10 = vpop.f32.mrf.mxu1 }
  0xf1   : > { %v463_v26 = vadd.f32 %v462_v10, %v3174_v4  ;;  %v952_v38 = vadd.f32 %v875_v61, %v727_v2  ;;  %v1099_v5 = vpop.f32.mrf.mxu0 }
  0xf3   : > { %v3285_v23 = vadd.f32 %v1097_v22, %v952_v38 }
  0xf6   : > { %v652_v53 = vpop.f32.mrf.mxu2 }
  0xf7   : > { %v877_v54 = vpop.f32.mrf.mxu3  ;;  %v728_v55 = vadd.f32 %v652_v53, %v463_v26  ;;  %v2384_v53 = vld [vmem:[%s2954_s6 + $0x100] sm:$0xff] }
  0xf8   : > { %v465_v52 = vpop.f32.mrf.mxu1 }
  0xf9   : > { %v466_v8 = vadd.f32 %v465_v52, %v3190_v14  ;;  %v953_v4 = vadd.f32 %v877_v54, %v728_v55  ;;  %v1102_v58 = vpop.f32.mrf.mxu0  ;;  %v2385_v54 = vld [vmem:[%s2954_s6 + $0x108] sm:$0xff] }
  0xfb   : > { %2337 = vmatmul.msk.bf16.gmra.mxu1 %vm253_vm1, %v3250_v31  ;;  %2354 = vmatmul.msk.bf16.gmra.mxu2 %vm253_vm1, %v3290_v16  ;;  %v3301_v22 = vadd.f32 %v1099_v5, %v953_v4 }
  0xfc   : > { %2405 = vmatmul.msk.bf16.gmra.mxu3 %vm253_vm1, %v3292_v63  ;;  %2454 = vmatmul.msk.bf16.gmra.mxu0 %vm253_vm1, %v2976_v18  ;;  %v3314_v18 = vpack.c.bf16 %v2385_v54, %v2384_v53  ;;  %v560_v54 = vld [vmem:[%s2954_s6 + $0xfa] sm:$0xff] }
  0xfd   : > { %3767 = vst [vmem:[#allocation14_spill] sm:$0xff] %v3301_v22  ;;  %v3312_v22 = vpack.c.bf16 %v558_v48, %v557_v24  ;;  %v559_v48 = vld [vmem:[%s2954_s6 + $0xf2] sm:$0xff] }
  0xfe   : > { %v655_v14 = vpop.f32.mrf.mxu2 }
  0xff   : > { %v880_v61 = vpop.f32.mrf.mxu3  ;;  %v729_v2 = vadd.f32 %v655_v14, %v466_v8 }
 0x100   : > { %v467_v10 = vpop.f32.mrf.mxu1 }
 0x101   : > { %v468_v26 = vadd.f32 %v467_v10, %v3206_v20  ;;  %v954_v38 = vadd.f32 %v880_v61, %v729_v2  ;;  %v1104_v21 = vpop.f32.mrf.mxu0 }
 0x103   : > { %v3307_v41 = vadd.f32 %v1102_v58, %v954_v38 }
 0x106   : > { %v657_v55 = vpop.f32.mrf.mxu2 }
 0x107   : > { %v882_v5 = vpop.f32.mrf.mxu3  ;;  %v730_v52 = vadd.f32 %v657_v55, %v468_v26  ;;  %v2386_v55 = vld [vmem:[%s2954_s6 + $0x118] sm:$0xff] }
 0x108   : > { %v470_v4 = vpop.f32.mrf.mxu1 }
 0x109   : > { %v471_v8 = vadd.f32 %v470_v4, %v3222_v34  ;;  %v955_v20 = vadd.f32 %v882_v5, %v730_v52  ;;  %v1107_v14 = vpop.f32.mrf.mxu0  ;;  %v2387_v5 = vld [vmem:[%s2954_s6 + $0x120] sm:$0xff] }
 0x10b   : > { %2338 = vmatmul.msk.bf16.gmra.mxu1 %vm253_vm1, %v3270_v43  ;;  %2355 = vmatmul.msk.bf16.gmra.mxu2 %vm253_vm1, %v3312_v22  ;;  %v3323_v58 = vadd.f32 %v1104_v21, %v955_v20 }
 0x10c   : > { %2406 = vmatmul.msk.bf16.gmra.mxu3 %vm253_vm1, %v3314_v18  ;;  %2455 = vmatmul.msk.bf16.gmra.mxu0 %vm253_vm1, %v2999_v32  ;;  %v3336_v32 = vpack.c.bf16 %v2387_v5, %v2386_v55  ;;  %v562_v5 = vld [vmem:[%s2954_s6 + $0x10a] sm:$0xff] }
 0x10d   : > { %3768 = vst [vmem:[#allocation15_spill] sm:$0xff] %v3323_v58  ;;  %v3334_v58 = vpack.c.bf16 %v560_v54, %v559_v48  ;;  %v561_v54 = vld [vmem:[%s2954_s6 + $0x102] sm:$0xff] }
 0x10e   : > { %v660_v34 = vpop.f32.mrf.mxu2 }
 0x10f   : > { %v885_v61 = vpop.f32.mrf.mxu3  ;;  %v731_v2 = vadd.f32 %v660_v34, %v471_v8 }
 0x110   : > { %v472_v10 = vpop.f32.mrf.mxu1 }
 0x111   : > { %v473_v26 = vadd.f32 %v472_v10, %v3238_v40  ;;  %v956_v38 = vadd.f32 %v885_v61, %v731_v2  ;;  %v1109_v24 = vpop.f32.mrf.mxu0 }
 0x113   : > { %v3329_v53 = vadd.f32 %v1107_v14, %v956_v38 }
 0x115   : > { %3769 = vst [vmem:[#allocation16_spill] sm:$0xff] %v3329_v53  ;;  %v3356_v53 = vpack.c.bf16 %v562_v5, %v561_v54  ;;  %v563_v54 = vld [vmem:[%s2954_s6 + $0x11a] sm:$0xff] }
 0x116   : > { %v662_v52 = vpop.f32.mrf.mxu2 }
 0x117   : > { %v887_v21 = vpop.f32.mrf.mxu3  ;;  %v732_v4 = vadd.f32 %v662_v52, %v473_v26  ;;  %v2388_v52 = vld [vmem:[%s2954_s6 + $0x128] sm:$0xff] }
 0x118   : > { %v475_v20 = vpop.f32.mrf.mxu1 }
 0x119   : > { %v957_v8 = vadd.f32 %v887_v21, %v732_v4  ;;  %v1112_v40 = vpop.f32.mrf.mxu0  ;;  %v476_v34 = vadd.f32 %v475_v20, %v3120_v45  ;;  %v2389_v21 = vld [vmem:[%s2954_s6 + $0x130] sm:$0xff] }
 0x11a   : > { %v3358_v45 = vpack.c.bf16 %v2389_v21, %v2388_v52  ;;  %v564_v52 = vld [vmem:[%s2954_s6 + $0x122] sm:$0xff] }
 0x11b   : > { %2339 = vmatmul.msk.bf16.gmra.mxu1 %vm253_vm1, %v3292_v63  ;;  %2356 = vmatmul.msk.bf16.gmra.mxu2 %vm253_vm1, %v3334_v58  ;;  %v3344_v14 = vadd.f32 %v1109_v24, %v957_v8  ;;  %v2390_v21 = vld [vmem:[%s2954_s6 + $0x140] sm:$0xff] }
 0x11c   : > { %2407 = vmatmul.msk.bf16.gmra.mxu3 %vm253_vm1, %v3336_v32  ;;  %2456 = vmatmul.msk.bf16.gmra.mxu0 %vm253_vm1, %v3020_v44 }
 0x11d   : > { %3770 = vst [vmem:[#allocation17_spill] sm:$0xff] %v3344_v14 }
 0x11e   : > { %v665_v61 = vpop.f32.mrf.mxu2 }
 0x11f   : > { %v890_v2 = vpop.f32.mrf.mxu3  ;;  %v733_v10 = vadd.f32 %v665_v61, %v476_v34 }
 0x120   : > { %v477_v26 = vpop.f32.mrf.mxu1 }
 0x121   : > { %v958_v38 = vadd.f32 %v890_v2, %v733_v10  ;;  %v1114_v48 = vpop.f32.mrf.mxu0  ;;  %v478_v24 = vadd.f32 %v477_v26, %v3140_v51 }
 0x123   : > { %v3350_v55 = vadd.f32 %v1112_v40, %v958_v38 }
 0x125   : > { %3771 = vst [vmem:[#allocation18_spill] sm:$0xff] %v3350_v55 }
 0x126   : > { %v667_v4 = vpop.f32.mrf.mxu2 }
 0x127   : > { %v892_v8 = vpop.f32.mrf.mxu3  ;;  %v734_v14 = vadd.f32 %v667_v4, %v478_v24  ;;  %v2391_v24 = vld [vmem:[%s2954_s6 + $0x148] sm:$0xff] }
 0x128   : > { %v480_v44 = vpop.f32.mrf.mxu1  ;;  %v2439_v4 = vld [vmem:[%s2954_s6 + $0x141] sm:$0xff] }
 0x129   : > { %v959_v20 = vadd.f32 %v892_v8, %v734_v14  ;;  %v1117_v34 = vpop.f32.mrf.mxu0  ;;  %v481_v40 = vadd.f32 %v480_v44, %v3152_v42  ;;  %v2440_v8 = vld [vmem:[%s2954_s6 + $0x149] sm:$0xff]  ;;  %v3380_v44 = vpack.c.bf16 %v564_v52, %v563_v54 }
 0x12b   : > { %2340 = vmatmul.msk.bf16.gmra.mxu1 %vm253_vm1, %v3314_v18  ;;  %2357 = vmatmul.msk.bf16.gmra.mxu2 %vm253_vm1, %v3356_v53  ;;  %v3366_v51 = vadd.f32 %v1114_v48, %v959_v20 }
 0x12c   : > { %2408 = vmatmul.msk.bf16.gmra.mxu3 %vm253_vm1, %v3358_v45  ;;  %2457 = vmatmul.msk.bf16.gmra.mxu0 %vm253_vm1, %v3057_v0 }
 0x12d   : > { %3772 = vst [vmem:[#allocation19_spill] sm:$0xff] %v3366_v51 }
 0x12e   : > { %v670_v14 = vpop.f32.mrf.mxu2 }
 0x12f   : > { %v895_v61 = vpop.f32.mrf.mxu3  ;;  %v735_v2 = vadd.f32 %v670_v14, %v481_v40  ;;  %v3382_v40 = vpack.c.bf16 %v2391_v24, %v2390_v21  ;;  %v3384_v14 = vpack.c.bf16 %v2440_v8, %v2439_v4  ;;  %v565_v24 = vld [vmem:[%s2954_s6 + $0x12a] sm:$0xff]  ;;  %v566_v4 = vld [vmem:[%s2954_s6 + $0x132] sm:$0xff] }
 0x130   : > { %v482_v10 = vpop.f32.mrf.mxu1  ;;  %v2392_v8 = vld [vmem:[%s2954_s6 + $0x150] sm:$0xff] }
 0x131   : > { %v960_v26 = vadd.f32 %v895_v61, %v735_v2  ;;  %v1119_v38 = vpop.f32.mrf.mxu0  ;;  %v483_v48 = vadd.f32 %v482_v10, %v3172_v3 }
 0x133   : > { %v3372_v5 = vadd.f32 %v1117_v34, %v960_v26 }
 0x135   : > { %3773 = vst [vmem:[#allocation20_spill] sm:$0xff] %v3372_v5 }
 0x136   : > { %v672_v20 = vpop.f32.mrf.mxu2 }
 0x137   : > { %v897_v0 = vpop.f32.mrf.mxu3  ;;  %v736_v51 = vadd.f32 %v672_v20, %v483_v48  ;;  %v2393_v20 = vld [vmem:[%s2954_s6 + $0x158] sm:$0xff] }
 0x138   : > { %v485_v42 = vpop.f32.mrf.mxu1 }
 0x139   : > { %v961_v34 = vadd.f32 %v897_v0, %v736_v51  ;;  %v1122_v61 = vpop.f32.mrf.mxu0  ;;  %v486_v51 = vadd.f32 %v485_v42, %v3184_v62  ;;  %v2441_v0 = vld [vmem:[%s2954_s6 + $0x151] sm:$0xff]  ;;  %v3406_v42 = vpack.c.bf16 %v566_v4, %v565_v24 }
 0x13b   : > { %2341 = vmatmul.msk.bf16.gmra.mxu1 %vm253_vm1, %v3336_v32  ;;  %2358 = vmatmul.msk.bf16.gmra.mxu2 %vm253_vm1, %v3380_v44  ;;  %v3392_v3 = vadd.f32 %v1119_v38, %v961_v34  ;;  %v2442_v34 = vld [vmem:[%s2954_s6 + $0x159] sm:$0xff] }
 0x13c   : > { %2409 = vmatmul.msk.bf16.gmra.mxu3 %vm253_vm1, %v3382_v40  ;;  %2458 = vmatmul.msk.bf16.gmra.mxu0 %vm253_vm1, %v3384_v14 }
 0x13d   : > { %3774 = vst [vmem:[#allocation21_spill] sm:$0xff] %v3392_v3 }
 0x13e   : > { %v675_v2 = vpop.f32.mrf.mxu2 }
 0x13f   : > { %v900_v10 = vpop.f32.mrf.mxu3  ;;  %v737_v26 = vadd.f32 %v675_v2, %v486_v51  ;;  %v3408_v51 = vpack.c.bf16 %v2393_v20, %v2392_v8  ;;  %v3410_v2 = vpack.c.bf16 %v2442_v34, %v2441_v0 }
 0x140   : > { %v487_v54 = vpop.f32.mrf.mxu1 }
 0x141   : > { %v962_v52 = vadd.f32 %v900_v10, %v737_v26  ;;  %v1124_v21 = vpop.f32.mrf.mxu0  ;;  %v488_v38 = vadd.f32 %v487_v54, %v3204_v19 }
 0x143   : > { %v3398_v48 = vadd.f32 %v1122_v61, %v962_v52 }
 0x146   : > { %v677_v3 = vpop.f32.mrf.mxu2 }
 0x147   : > { %v902_v5 = vpop.f32.mrf.mxu3  ;;  %v738_v55 = vadd.f32 %v677_v3, %v488_v38 }
 0x148   : > { %v490_v62 = vpop.f32.mrf.mxu1 }
 0x149   : > { %v963_v10 = vadd.f32 %v902_v5, %v738_v55  ;;  %v1127_v61 = vpop.f32.mrf.mxu0  ;;  %v491_v3 = vadd.f32 %v490_v62, %v3216_v17 }
 0x14b   : > { %2342 = vmatmul.msk.bf16.gmra.mxu1 %vm253_vm1, %v3358_v45  ;;  %2359 = vmatmul.msk.bf16.gmra.mxu2 %vm253_vm1, %v3406_v42  ;;  %v3418_v19 = vadd.f32 %v1124_v21, %v963_v10 }
 0x14c   : > { %2410 = vmatmul.msk.bf16.gmra.mxu3 %vm253_vm1, %v3408_v51  ;;  %2459 = vmatmul.msk.bf16.gmra.mxu0 %vm253_vm1, %v3410_v2 }
 0x14e   : > { %v680_v26 = vpop.f32.mrf.mxu2 }
 0x14f   : > { %v905_v54 = vpop.f32.mrf.mxu3  ;;  %v739_v55 = vadd.f32 %v680_v26, %v491_v3 }
 0x150   : > { %v492_v5 = vpop.f32.mrf.mxu1 }
 0x151   : > { %v964_v52 = vadd.f32 %v905_v54, %v739_v55  ;;  %v1129_v24 = vpop.f32.mrf.mxu0  ;;  %v493_v8 = vadd.f32 %v492_v5, %v3236_v39 }
 0x153   : > { %v3423_v4 = vadd.f32 %v1127_v61, %v964_v52 }
 0x156   : > { %v682_v20 = vpop.f32.mrf.mxu2 }
 0x157   : > { %v907_v38 = vpop.f32.mrf.mxu3  ;;  %v740_v0 = vadd.f32 %v682_v20, %v493_v8 }
 0x158   : > { %v495_v21 = vpop.f32.mrf.mxu1 }
 0x159   : > { %v965_v34 = vadd.f32 %v907_v38, %v740_v0  ;;  %v1132_v10 = vpop.f32.mrf.mxu0  ;;  %v496_v39 = vadd.f32 %v495_v21, %v3136_v49 }
 0x15b   : > { %2493 = vmatmul.msk.bf16.vlgmr.msra.gmra.mxu1 %vm253_vm1, %v3090_v27  ;;  %2544 = vmatmul.msk.bf16.vlgmr.msra.gmra.mxu2 %vm253_vm1, %v3092_v28  ;;  %v3432_v17 = vadd.f32 %v1129_v24, %v965_v34 }
 0x15c   : > { %2593 = vmatmul.msk.bf16.vlgmr.msra.gmra.mxu3 %vm253_vm1, %v2969_v13  ;;  %2642 = vmatmul.msk.bf16.vlgmr.msra.gmra.mxu0 %vm253_vm1, %v3122_v46 }
 0x15e   : > { %v685_v62 = vpop.f32.mrf.mxu2 }
 0x15f   : > { %v910_v61 = vpop.f32.mrf.mxu3  ;;  %v741_v3 = vadd.f32 %v685_v62, %v496_v39  ;;  %v2564_v62 = vld [vmem:[%s2954_s6 + $0x79] sm:$0xff] }
 0x160   : > { %v497_v26 = vpop.f32.mrf.mxu1 }
 0x161   : > { %v966_v54 = vadd.f32 %v910_v61, %v741_v3  ;;  %v1134_v55 = vpop.f32.mrf.mxu0  ;;  %v498_v28 = vadd.f32 %v497_v26, %v3148_v57 }
 0x163   : > { %v3437_v27 = vadd.f32 %v1132_v10, %v966_v54 }
 0x166   : > { %v687_v5 = vpop.f32.mrf.mxu2 }
 0x167   : > { %v912_v52 = vpop.f32.mrf.mxu3  ;;  %v742_v13 = vadd.f32 %v687_v5, %v498_v28 }
 0x168   : > { %v500_v24 = vpop.f32.mrf.mxu1 }
 0x169   : > { %v967_v8 = vadd.f32 %v912_v52, %v742_v13  ;;  %v1137_v20 = vpop.f32.mrf.mxu0  ;;  %v501_v57 = vadd.f32 %v500_v24, %v3168_v1 }
 0x16b   : > { %2494 = vmatmul.msk.bf16.gmra.mxu1 %vm253_vm1, %v3105_v36  ;;  %2545 = vmatmul.msk.bf16.gmra.mxu2 %vm253_vm1, %v3107_v37  ;;  %v3446_v49 = vadd.f32 %v1134_v55, %v967_v8  ;;  %v2565_v37 = vld [vmem:[%s2954_s6 + $0x81] sm:$0xff] }
 0x16c   : > { %2594 = vmatmul.msk.bf16.gmra.mxu3 %vm253_vm1, %v2995_v30  ;;  %2643 = vmatmul.msk.bf16.gmra.mxu0 %vm253_vm1, %v3154_v59  ;;  %v1685_v55 = vpack.c.bf16 %v2565_v37, %v2564_v62 }
 0x16e   : > { %v690_v38 = vpop.f32.mrf.mxu2 }
 0x16f   : > { %v915_v0 = vpop.f32.mrf.mxu3  ;;  %v743_v21 = vadd.f32 %v690_v38, %v501_v57 }
 0x170   : > { %v502_v34 = vpop.f32.mrf.mxu1 }
 0x171   : > { %v968_v10 = vadd.f32 %v915_v0, %v743_v21  ;;  %v1139_v39 = vpop.f32.mrf.mxu0  ;;  %v503_v61 = vadd.f32 %v502_v34, %v3180_v9  ;;  %v2567_v0 = vld [vmem:[%s2954_s6 + $0x91] sm:$0xff] }
 0x173   : > { %v3451_v36 = vadd.f32 %v1137_v20, %v968_v10 }
 0x176   : > { %v692_v30 = vpop.f32.mrf.mxu2 }
 0x177   : > { %v917_v3 = vpop.f32.mrf.mxu3  ;;  %v744_v26 = vadd.f32 %v692_v30, %v503_v61 }
 0x178   : > { %v505_v54 = vpop.f32.mrf.mxu1 }
 0x179   : > { %v969_v28 = vadd.f32 %v917_v3, %v744_v26  ;;  %v1142_v1 = vpop.f32.mrf.mxu0  ;;  %v506_v9 = vadd.f32 %v505_v54, %v3200_v15 }
 0x17b   : > { %2495 = vmatmul.msk.bf16.gmra.mxu1 %vm253_vm1, %v3122_v46  ;;  %2546 = vmatmul.msk.bf16.gmra.mxu2 %vm253_vm1, %v3124_v47  ;;  %v3461_v5 = vadd.f32 %v1139_v39, %v969_v28  ;;  %v2566_v46 = vld [vmem:[%s2954_s6 + $0x89] sm:$0xff] }
 0x17c   : > { %2595 = vmatmul.msk.bf16.gmra.mxu3 %vm253_vm1, %v1685_v55  ;;  %2644 = vmatmul.msk.bf16.gmra.mxu0 %vm253_vm1, %v3186_v11  ;;  %v1686_v62 = vpack.c.bf16 %v2567_v0, %v2566_v46 }
 0x17e   : > { %v695_v52 = vpop.f32.mrf.mxu2 }
 0x17f   : > { %v920_v13 = vpop.f32.mrf.mxu3  ;;  %v745_v24 = vadd.f32 %v695_v52, %v506_v9  ;;  %v2569_v9 = vld [vmem:[%s2954_s6 + $0xa9] sm:$0xff] }
 0x180   : > { %v507_v8 = vpop.f32.mrf.mxu1 }
 0x181   : > { %v970_v20 = vadd.f32 %v920_v13, %v745_v24  ;;  %v1144_v57 = vpop.f32.mrf.mxu0  ;;  %v508_v47 = vadd.f32 %v507_v8, %v3212_v25 }
 0x183   : > { %v3466_v38 = vadd.f32 %v1142_v1, %v970_v20 }
 0x186   : > { %v697_v21 = vpop.f32.mrf.mxu2 }
 0x187   : > { %v922_v34 = vpop.f32.mrf.mxu3  ;;  %v746_v10 = vadd.f32 %v697_v21, %v508_v47 }
 0x188   : > { %v510_v39 = vpop.f32.mrf.mxu1 }
 0x189   : > { %v971_v37 = vadd.f32 %v922_v34, %v746_v10  ;;  %v1147_v15 = vpop.f32.mrf.mxu0  ;;  %v511_v25 = vadd.f32 %v510_v39, %v3232_v35 }
 0x18b   : > { %2496 = vmatmul.msk.bf16.gmra.mxu1 %vm253_vm1, %v3154_v59  ;;  %2547 = vmatmul.msk.bf16.gmra.mxu2 %vm253_vm1, %v3156_v60  ;;  %v3476_v61 = vadd.f32 %v1144_v57, %v971_v37  ;;  %v2568_v59 = vld [vmem:[%s2954_s6 + $0xa1] sm:$0xff] }
 0x18c   : > { %2596 = vmatmul.msk.bf16.gmra.mxu3 %vm253_vm1, %v1686_v62  ;;  %2645 = vmatmul.msk.bf16.gmra.mxu0 %vm253_vm1, %v3218_v29  ;;  %v1687_v20 = vpack.c.bf16 %v2569_v9, %v2568_v59 }
 0x18e   : > { %v700_v30 = vpop.f32.mrf.mxu2 }
 0x18f   : > { %v925_v3 = vpop.f32.mrf.mxu3  ;;  %v747_v26 = vadd.f32 %v700_v30, %v511_v25 }
 0x190   : > { %v512_v54 = vpop.f32.mrf.mxu1 }
 0x191   : > { %v972_v55 = vadd.f32 %v925_v3, %v747_v26  ;;  %v1149_v28 = vpop.f32.mrf.mxu0  ;;  %v513_v60 = vadd.f32 %v512_v54, %v3244_v56  ;;  %v3775_v56 = vld [vmem:[#allocation5_spill] sm:$0xff] }
 0x193   : > { %v3481_v1 = vadd.f32 %v1147_v15, %v972_v55  ;;  %v2571_v15 = vld [vmem:[%s2954_s6 + $0xb9] sm:$0xff] }
 0x196   : > { %v702_v52 = vpop.f32.mrf.mxu2 }
 0x197   : > { %v927_v13 = vpop.f32.mrf.mxu3  ;;  %v748_v24 = vadd.f32 %v702_v52, %v513_v60  ;;  %v3777_v60 = vld [vmem:[#allocation7_spill] sm:$0xff] }
 0x198   : > { %v515_v8 = vpop.f32.mrf.mxu1 }
 0x199   : > { %v973_v57 = vadd.f32 %v927_v13, %v748_v24  ;;  %v1152_v35 = vpop.f32.mrf.mxu0  ;;  %v516_v0 = vadd.f32 %v515_v8, %v3775_v56 }
 0x19b   : > { %2497 = vmatmul.msk.bf16.gmra.mxu1 %vm253_vm1, %v3186_v11  ;;  %2548 = vmatmul.msk.bf16.gmra.mxu2 %vm253_vm1, %v3188_v12  ;;  %v3491_v46 = vadd.f32 %v1149_v28, %v973_v57  ;;  %v2570_v11 = vld [vmem:[%s2954_s6 + $0xb1] sm:$0xff]  ;;  %v3776_v12 = vld [vmem:[#allocation6_spill] sm:$0xff] }
 0x19c   : > { %2597 = vmatmul.msk.bf16.gmra.mxu3 %vm253_vm1, %v1687_v20  ;;  %2646 = vmatmul.msk.bf16.gmra.mxu0 %vm253_vm1, %v3248_v7  ;;  %v1688_v55 = vpack.c.bf16 %v2571_v15, %v2570_v11 }
 0x19e   : > { %v705_v47 = vpop.f32.mrf.mxu2 }
 0x19f   : > { %v930_v21 = vpop.f32.mrf.mxu3  ;;  %v749_v34 = vadd.f32 %v705_v47, %v516_v0  ;;  %v2573_v0 = vld [vmem:[%s2954_s6 + $0xd1] sm:$0xff] }
 0x1a0   : > { %v517_v10 = vpop.f32.mrf.mxu1 }
 0x1a1   : > { %v974_v39 = vadd.f32 %v930_v21, %v749_v34  ;;  %v1154_v62 = vpop.f32.mrf.mxu0  ;;  %v518_v25 = vadd.f32 %v517_v10, %v3776_v12 }
 0x1a3   : > { %v3496_v37 = vadd.f32 %v1152_v35, %v974_v39 }
 0x1a6   : > { %v707_v30 = vpop.f32.mrf.mxu2 }
 0x1a7   : > { %v932_v3 = vpop.f32.mrf.mxu3  ;;  %v750_v26 = vadd.f32 %v707_v30, %v518_v25  ;;  %v3779_v25 = vld [vmem:[#allocation9_spill] sm:$0xff] }
 0x1a8   : > { %v520_v54 = vpop.f32.mrf.mxu1 }
 0x1a9   : > { %v975_v28 = vadd.f32 %v932_v3, %v750_v26  ;;  %v1157_v59 = vpop.f32.mrf.mxu0  ;;  %v521_v52 = vadd.f32 %v520_v54, %v3777_v60 }
 0x1ab   : > { %2498 = vmatmul.msk.bf16.gmra.mxu1 %vm253_vm1, %v3218_v29  ;;  %2549 = vmatmul.msk.bf16.gmra.mxu2 %vm253_vm1, %v3220_v33  ;;  %v3506_v9 = vadd.f32 %v1154_v62, %v975_v28  ;;  %v2572_v29 = vld [vmem:[%s2954_s6 + $0xc9] sm:$0xff]  ;;  %v3778_v33 = vld [vmem:[#allocation8_spill] sm:$0xff] }
 0x1ac   : > { %2598 = vmatmul.msk.bf16.gmra.mxu3 %vm253_vm1, %v1688_v55  ;;  %2647 = vmatmul.msk.bf16.gmra.mxu0 %vm253_vm1, %v3268_v50  ;;  %v1689_v62 = vpack.c.bf16 %v2573_v0, %v2572_v29 }
 0x1ae   : > { %v710_v13 = vpop.f32.mrf.mxu2 }
 0x1af   : > { %v935_v24 = vpop.f32.mrf.mxu3  ;;  %v751_v8 = vadd.f32 %v710_v13, %v521_v52  ;;  %v2575_v52 = vld [vmem:[%s2954_s6 + $0xe1] sm:$0xff] }
 0x1b0   : > { %v522_v20 = vpop.f32.mrf.mxu1 }
 0x1b1   : > { %v976_v57 = vadd.f32 %v935_v24, %v751_v8  ;;  %v1159_v35 = vpop.f32.mrf.mxu0  ;;  %v523_v47 = vadd.f32 %v522_v20, %v3778_v33 }
 0x1b3   : > { %v3511_v56 = vadd.f32 %v1157_v59, %v976_v57 }
 0x1b6   : > { %v712_v21 = vpop.f32.mrf.mxu2 }
 0x1b7   : > { %v937_v34 = vpop.f32.mrf.mxu3  ;;  %v752_v10 = vadd.f32 %v712_v21, %v523_v47  ;;  %v3781_v47 = vld [vmem:[#allocation11_spill] sm:$0xff] }
 0x1b8   : > { %v525_v39 = vpop.f32.mrf.mxu1 }
 0x1b9   : > { %v977_v11 = vadd.f32 %v937_v34, %v752_v10  ;;  %v1162_v15 = vpop.f32.mrf.mxu0  ;;  %v526_v30 = vadd.f32 %v525_v39, %v3779_v25 }
 0x1bb   : > { %2499 = vmatmul.msk.bf16.gmra.mxu1 %vm253_vm1, %v3248_v7  ;;  %2550 = vmatmul.msk.bf16.gmra.mxu2 %vm253_vm1, %v3250_v31  ;;  %v3521_v12 = vadd.f32 %v1159_v35, %v977_v11  ;;  %v2574_v7 = vld [vmem:[%s2954_s6 + $0xd9] sm:$0xff]  ;;  %v3780_v31 = vld [vmem:[#allocation10_spill] sm:$0xff] }
 0x1bc   : > { %2599 = vmatmul.msk.bf16.gmra.mxu3 %vm253_vm1, %v1689_v62  ;;  %2648 = vmatmul.msk.bf16.gmra.mxu0 %vm253_vm1, %v3290_v16  ;;  %v1690_v35 = vpack.c.bf16 %v2575_v52, %v2574_v7 }
 0x1be   : > { %v715_v3 = vpop.f32.mrf.mxu2 }
 0x1bf   : > { %v940_v26 = vpop.f32.mrf.mxu3  ;;  %v753_v54 = vadd.f32 %v715_v3, %v526_v30  ;;  %v2577_v30 = vld [vmem:[%s2954_s6 + $0xf9] sm:$0xff] }
 0x1c0   : > { %v527_v55 = vpop.f32.mrf.mxu1 }
 0x1c1   : > { %v978_v28 = vadd.f32 %v940_v26, %v753_v54  ;;  %v1164_v59 = vpop.f32.mrf.mxu0  ;;  %v528_v13 = vadd.f32 %v527_v55, %v3780_v31 }
 0x1c3   : > { %v3526_v60 = vadd.f32 %v1162_v15, %v978_v28 }
 0x1c6   : > { %v717_v24 = vpop.f32.mrf.mxu2 }
 0x1c7   : > { %v942_v8 = vpop.f32.mrf.mxu3  ;;  %v754_v20 = vadd.f32 %v717_v24, %v528_v13 }
 0x1c8   : > { %v530_v57 = vpop.f32.mrf.mxu1 }
 0x1c9   : > { %v979_v29 = vadd.f32 %v942_v8, %v754_v20  ;;  %v1167_v0 = vpop.f32.mrf.mxu0  ;;  %v531_v21 = vadd.f32 %v530_v57, %v3781_v47  ;;  %v3783_v47 = vld [vmem:[#allocation13_spill] sm:$0xff] }
 0x1cb   : > { %2500 = vmatmul.msk.bf16.gmra.mxu1 %vm253_vm1, %v3268_v50  ;;  %2551 = vmatmul.msk.bf16.gmra.mxu2 %vm253_vm1, %v3270_v43  ;;  %v3536_v33 = vadd.f32 %v1164_v59, %v979_v29  ;;  %v2576_v50 = vld [vmem:[%s2954_s6 + $0xf1] sm:$0xff] }
 0x1cc   : > { %2600 = vmatmul.msk.bf16.gmra.mxu3 %vm253_vm1, %v1690_v35  ;;  %2649 = vmatmul.msk.bf16.gmra.mxu0 %vm253_vm1, %v3312_v22  ;;  %v3782_v43 = vld [vmem:[#allocation12_spill] sm:$0xff]  ;;  %v1691_v59 = vpack.c.bf16 %v2577_v30, %v2576_v50 }
 0x1ce   : > { %v720_v34 = vpop.f32.mrf.mxu2 }
 0x1cf   : > { %v945_v10 = vpop.f32.mrf.mxu3  ;;  %v755_v39 = vadd.f32 %v720_v34, %v531_v21 }
 0x1d0   : > { %v532_v62 = vpop.f32.mrf.mxu1 }
 0x1d1   : > { %v980_v11 = vadd.f32 %v945_v10, %v755_v39  ;;  %v1169_v15 = vpop.f32.mrf.mxu0  ;;  %v533_v3 = vadd.f32 %v532_v62, %v3782_v43  ;;  %v3562_v39 = vld [vmem:[%s3754_s2] ss:$0 sm:$0xff] }
 0x1d3   : > { %v3541_v25 = vadd.f32 %v1167_v0, %v980_v11  ;;  %v2579_v0 = vld [vmem:[%s2954_s6 + $0x109] sm:$0xff] }
 0x1d6   : > { %v722_v26 = vpop.f32.mrf.mxu2 }
 0x1d7   : > { %v947_v54 = vpop.f32.mrf.mxu3  ;;  %v756_v55 = vadd.f32 %v722_v26, %v533_v3 }
 0x1d8   : > { %v1314_v28 = vpop.f32.mrf.mxu1 }
 0x1d9   : > { %v981_v7 = vadd.f32 %v947_v54, %v756_v55  ;;  %v1983_v52 = vpop.f32.mrf.mxu0  ;;  %v1394_v13 = vadd.f32 %v1314_v28, %v3263_v6 }
 0x1db   : > { %2501 = vmatmul.msk.bf16.gmra.mxu1 %vm253_vm1, %v3290_v16  ;;  %2552 = vmatmul.msk.bf16.gmra.mxu2 %vm253_vm1, %v3292_v63  ;;  %v3551_v31 = vadd.f32 %v1169_v15, %v981_v7  ;;  %v2578_v16 = vld [vmem:[%s2954_s6 + $0x101] sm:$0xff] }
 0x1dc   : > { %2601 = vmatmul.msk.bf16.gmra.mxu3 %vm253_vm1, %v1691_v59  ;;  %2650 = vmatmul.msk.bf16.gmra.mxu0 %vm253_vm1, %v3334_v58  ;;  %v1692_v11 = vpack.c.bf16 %v2579_v0, %v2578_v16 }
 0x1de   : > { %v1539_v24 = vpop.f32.mrf.mxu2 }
 0x1df   : > { %v1761_v8 = vpop.f32.mrf.mxu3  ;;  %v1619_v20 = vadd.f32 %v1539_v24, %v1394_v13  ;;  %v2580_v24 = vld [vmem:[%s2954_s6 + $0x119] sm:$0xff] }
 0x1e0   : > { %v1316_v57 = vpop.f32.mrf.mxu1 }
 0x1e1   : > { %v1985_v35 = vpop.f32.mrf.mxu0  ;;  %v1841_v29 = vadd.f32 %v1761_v8, %v1619_v20  ;;  %v1395_v63 = vadd.f32 %v1316_v57, %v3783_v47  ;;  %v2581_v8 = vld [vmem:[%s2954_s6 + $0x121] sm:$0xff] }
 0x1e2   : > { %v3784_v20 = vld [vmem:[#allocation14_spill] sm:$0xff]  ;;  %v1693_v47 = vpack.c.bf16 %v2581_v8, %v2580_v24 }
 0x1e3   : > { %v2063_v10 = vadd.f32 %v1983_v52, %v1841_v29 }
 0x1e5   : > { %v2099_v30 = vadd.f32 %v3562_v39, %v2063_v10 }
 0x1e6   : > { %v1541_v21 = vpop.f32.mrf.mxu2 }
 0x1e7   : > { %v1763_v34 = vpop.f32.mrf.mxu3  ;;  %v1620_v6 = vadd.f32 %v1541_v21, %v1395_v63  ;;  %v2131_v55 = vmax.f32 %v2099_v30, 0.0 }
 0x1e8   : > { %v1319_v62 = vpop.f32.mrf.mxu1 }
 0x1e9   : > { %v1842_v15 = vadd.f32 %v1763_v34, %v1620_v6  ;;  %v1988_v50 = vpop.f32.mrf.mxu0  ;;  %v1396_v26 = vadd.f32 %v1319_v62, %v3285_v23 }
 0x1eb   : > { %2502 = vmatmul.msk.bf16.gmra.mxu1 %vm253_vm1, %v3312_v22  ;;  %v2064_v43 = vadd.f32 %v1985_v35, %v1842_v15  ;;  %2553 = vmatmul.msk.bf16.gmra.mxu2 %vm253_vm1, %v3314_v18 }
 0x1ec   : > { %2602 = vmatmul.msk.bf16.gmra.mxu3 %vm253_vm1, %v1692_v11  ;;  %2651 = vmatmul.msk.bf16.gmra.mxu0 %vm253_vm1, %v3356_v53 }
 0x1ed   : > { %v2100_v3 = vadd.f32 %v3562_v39, %v2064_v43 }
 0x1ee   : > { %v1544_v22 = vpop.f32.mrf.mxu2 }
 0x1ef   : > { %v1766_v54 = vpop.f32.mrf.mxu3  ;;  %v2132_v28 = vmax.f32 %v2100_v3, 0.0  ;;  %v1621_v59 = vadd.f32 %v1544_v22, %v1396_v26  ;;  %v2582_v22 = vld [vmem:[%s2954_s6 + $0x129] sm:$0xff] }
 0x1f0   : > { %v1321_v7 = vpop.f32.mrf.mxu1 }
 0x1f1   : > { %v2669_v18 = vpack.c.bf16 %v2132_v28, %v2131_v55  ;;  %v1990_v52 = vpop.f32.mrf.mxu0  ;;  %v1843_v13 = vadd.f32 %v1766_v54, %v1621_v59  ;;  %v1397_v57 = vadd.f32 %v1321_v7, %v3784_v20  ;;  %v2583_v54 = vld [vmem:[%s2954_s6 + $0x131] sm:$0xff] }
 0x1f2   : > { %v3785_v55 = vld [vmem:[#allocation15_spill] sm:$0xff] }
 0x1f3   : > { %2670 = vst [vmem:[%s3577_s5] sm:$0xff] %v2669_v18   ;;  %v2065_v23 = vadd.f32 %v1988_v50, %v1843_v13 }
 0x1f5   : > { %v2101_v34 = vadd.f32 %v3562_v39, %v2065_v23 }
 0x1f6   : > { %v1546_v35 = vpop.f32.mrf.mxu2 }
 0x1f7   : > { %v1768_v29 = vpop.f32.mrf.mxu3  ;;  %v1622_v16 = vadd.f32 %v1546_v35, %v1397_v57  ;;  %v2133_v15 = vmax.f32 %v2101_v34, 0.0 }
 0x1f8   : > { %v1324_v0 = vpop.f32.mrf.mxu1 }
 0x1f9   : > { %v1844_v63 = vadd.f32 %v1768_v29, %v1622_v16  ;;  %v1993_v21 = vpop.f32.mrf.mxu0  ;;  %v1398_v62 = vadd.f32 %v1324_v0, %v3307_v41  ;;  %v1694_v41 = vpack.c.bf16 %v2583_v54, %v2582_v22  ;;  %v3786_v29 = vld [vmem:[#allocation16_spill] sm:$0xff] }
 0x1fb   : > { %2503 = vmatmul.msk.bf16.gmra.mxu1 %vm253_vm1, %v3334_v58  ;;  %v2066_v10 = vadd.f32 %v1990_v52, %v1844_v63  ;;  %2554 = vmatmul.msk.bf16.gmra.mxu2 %vm253_vm1, %v3336_v32 }
 0x1fc   : > { %2603 = vmatmul.msk.bf16.gmra.mxu3 %vm253_vm1, %v1693_v47  ;;  %2652 = vmatmul.msk.bf16.gmra.mxu0 %vm253_vm1, %v3380_v44 }
 0x1fd   : > { %v2102_v6 = vadd.f32 %v3562_v39, %v2066_v10 }
 0x1fe   : > { %v1549_v11 = vpop.f32.mrf.mxu2 }
 0x1ff   : > { %v1771_v58 = vpop.f32.mrf.mxu3  ;;  %v2134_v50 = vmax.f32 %v2102_v6, 0.0  ;;  %v1623_v30 = vadd.f32 %v1549_v11, %v1398_v62  ;;  %v3787_v6 = vld [vmem:[#allocation17_spill] sm:$0xff] }
 0x200   : > { %v1326_v43 = vpop.f32.mrf.mxu1  ;;  %v2633_v11 = vld [vmem:[%s2954_s6 + $0x142] sm:$0xff] }
 0x201   : > { %v2674_v3 = vpack.c.bf16 %v2134_v50, %v2133_v15  ;;  %v1995_v26 = vpop.f32.mrf.mxu0  ;;  %v1845_v32 = vadd.f32 %v1771_v58, %v1623_v30  ;;  %v1399_v28 = vadd.f32 %v1326_v43, %v3785_v55  ;;  %v2634_v58 = vld [vmem:[%s2954_s6 + $0x14a] sm:$0xff] }
 0x203   : > { %2746 = vst [vmem:[%s3577_s5 + $0x8] sm:$0xff] %v2674_v3   ;;  %v2067_v18 = vadd.f32 %v1993_v21, %v1845_v32 }
 0x205   : > { %v2103_v20 = vadd.f32 %v3562_v39, %v2067_v18 }
 0x206   : > { %v1551_v59 = vpop.f32.mrf.mxu2 }
 0x207   : > { %v1773_v7 = vpop.f32.mrf.mxu3  ;;  %v1624_v52 = vadd.f32 %v1551_v59, %v1399_v28  ;;  %v2135_v0 = vmax.f32 %v2103_v20, 0.0  ;;  %v3788_v59 = vld [vmem:[#allocation18_spill] sm:$0xff] }
 0x208   : > { %v1329_v13 = vpop.f32.mrf.mxu1 }
 0x209   : > { %v1846_v24 = vadd.f32 %v1773_v7, %v1624_v52  ;;  %v1998_v8 = vpop.f32.mrf.mxu0  ;;  %v1400_v23 = vadd.f32 %v1329_v13, %v3786_v29  ;;  %v2636_v29 = vld [vmem:[%s2954_s6 + $0x15a] sm:$0xff] }
 0x20b   : > { %2504 = vmatmul.msk.bf16.gmra.mxu1 %vm253_vm1, %v3356_v53  ;;  %v2068_v57 = vadd.f32 %v1995_v26, %v1846_v24  ;;  %2555 = vmatmul.msk.bf16.gmra.mxu2 %vm253_vm1, %v3358_v45  ;;  %v3611_v26 = vpack.c.bf16 %v2634_v58, %v2633_v11 }
 0x20c   : > { %2604 = vmatmul.msk.bf16.gmra.mxu3 %vm253_vm1, %v1694_v41  ;;  %2653 = vmatmul.msk.bf16.gmra.mxu0 %vm253_vm1, %v3406_v42 }
 0x20d   : > { %v2104_v35 = vadd.f32 %v3562_v39, %v2068_v57  ;;  %v3789_v57 = vld [vmem:[#allocation19_spill] sm:$0xff] }
 0x20e   : > { %v1554_v16 = vpop.f32.mrf.mxu2 }
 0x20f   : > { %v1776_v53 = vpop.f32.mrf.mxu3  ;;  %v2136_v47 = vmax.f32 %v2104_v35, 0.0  ;;  %v1625_v63 = vadd.f32 %v1554_v16, %v1400_v23  ;;  %v2635_v35 = vld [vmem:[%s2954_s6 + $0x152] sm:$0xff] }
 0x210   : > { %v1331_v21 = vpop.f32.mrf.mxu1 }
 0x211   : > { %v2679_v34 = vpack.c.bf16 %v2136_v47, %v2135_v0  ;;  %v2000_v10 = vpop.f32.mrf.mxu0  ;;  %v1847_v45 = vadd.f32 %v1776_v53, %v1625_v63  ;;  %v1401_v62 = vadd.f32 %v1331_v21, %v3787_v6  ;;  %v3628_v63 = vpack.c.bf16 %v2636_v29, %v2635_v35 }
 0x213   : > { %2747 = vst [vmem:[%s3577_s5 + $0x10] sm:$0xff] %v2679_v34   ;;  %v2069_v30 = vadd.f32 %v1998_v8, %v1847_v45 }
 0x215   : > { %v2105_v54 = vadd.f32 %v3562_v39, %v2069_v30 }
 0x216   : > { %v1556_v15 = vpop.f32.mrf.mxu2 }
 0x217   : > { %v1778_v50 = vpop.f32.mrf.mxu3  ;;  %v1626_v43 = vadd.f32 %v1556_v15, %v1401_v62  ;;  %v2137_v52 = vmax.f32 %v2105_v54, 0.0  ;;  %v2588_v54 = vld [vmem:[%s2954_s6 + $0x169] sm:$0xff] }
 0x218   : > { %v1334_v3 = vpop.f32.mrf.mxu1 }
 0x219   : > { %v1848_v32 = vadd.f32 %v1778_v50, %v1626_v43  ;;  %v2003_v22 = vpop.f32.mrf.mxu0  ;;  %v1402_v7 = vadd.f32 %v1334_v3, %v3788_v59 }
 0x21b   : > { %2505 = vmatmul.msk.bf16.gmra.mxu1 %vm253_vm1, %v3380_v44  ;;  %v2070_v55 = vadd.f32 %v2000_v10, %v1848_v32  ;;  %2556 = vmatmul.msk.bf16.gmra.mxu2 %vm253_vm1, %v3382_v40  ;;  %v2539_v32 = vld [vmem:[%s2954_s6 + $0x168] sm:$0xff] }
 0x21c   : > { %2605 = vmatmul.msk.bf16.gmra.mxu3 %vm253_vm1, %v3384_v14  ;;  %2654 = vmatmul.msk.bf16.gmra.mxu0 %vm253_vm1, %v3611_v26 }
 0x21d   : > { %v2106_v28 = vadd.f32 %v3562_v39, %v2070_v55  ;;  %v2589_v55 = vld [vmem:[%s2954_s6 + $0x171] sm:$0xff] }
 0x21e   : > { %v1559_v44 = vpop.f32.mrf.mxu2 }
 0x21f   : > { %v1781_v18 = vpop.f32.mrf.mxu3  ;;  %v2138_v13 = vmax.f32 %v2106_v28, 0.0  ;;  %v1627_v41 = vadd.f32 %v1559_v44, %v1402_v7  ;;  %v3791_v28 = vld [vmem:[#allocation21_spill] sm:$0xff]  ;;  %v2637_v7 = vld [vmem:[%s2954_s6 + $0x16a] sm:$0xff]  ;;  %v2638_v44 = vld [vmem:[%s2954_s6 + $0x172] sm:$0xff] }
 0x220   : > { %v1336_v24 = vpop.f32.mrf.mxu1 }
 0x221   : > { %v2684_v8 = vpack.c.bf16 %v2138_v13, %v2137_v52  ;;  %v2005_v40 = vpop.f32.mrf.mxu0  ;;  %v1849_v20 = vadd.f32 %v1781_v18, %v1627_v41  ;;  %v1403_v14 = vadd.f32 %v1336_v24, %v3789_v57 }
 0x223   : > { %2748 = vst [vmem:[%s3577_s5 + $0x18] sm:$0xff] %v2684_v8   ;;  %v2071_v53 = vadd.f32 %v2003_v22, %v1849_v20  ;;  %v2540_v22 = vld [vmem:[%s2954_s6 + $0x170] sm:$0xff]  ;;  %v1919_v20 = vpack.c.bf16 %v2638_v44, %v2637_v7 }
 0x224   : > { %v1475_v8 = vpack.c.bf16 %v2540_v22, %v2539_v32 }
 0x225   : > { %v2107_v10 = vadd.f32 %v3562_v39, %v2071_v53 }
 0x226   : > { %v1561_v23 = vpop.f32.mrf.mxu2 }
 0x227   : > { %v1783_v16 = vpop.f32.mrf.mxu3  ;;  %v1628_v0 = vadd.f32 %v1561_v23, %v1403_v14  ;;  %v2139_v15 = vmax.f32 %v2107_v10, 0.0 }
 0x228   : > { %v1339_v47 = vpop.f32.mrf.mxu1 }
 0x229   : > { %v1850_v21 = vadd.f32 %v1783_v16, %v1628_v0  ;;  %v2008_v34 = vpop.f32.mrf.mxu0 }
 0x22b   : > { %2506 = vmatmul.msk.bf16.gmra.mxu1 %vm253_vm1, %v3406_v42  ;;  %v2072_v45 = vadd.f32 %v2005_v40, %v1850_v21  ;;  %2557 = vmatmul.msk.bf16.gmra.mxu2 %vm253_vm1, %v3408_v51  ;;  %v3790_v42 = vld [vmem:[#allocation20_spill] sm:$0xff]  ;;  %v1697_v40 = vpack.c.bf16 %v2589_v55, %v2588_v54 }
 0x22c   : > { %2606 = vmatmul.msk.bf16.gmra.mxu3 %vm253_vm1, %v3410_v2  ;;  %2655 = vmatmul.msk.bf16.gmra.mxu0 %vm253_vm1, %v3628_v63  ;;  %v1404_v62 = vadd.f32 %v1339_v47, %v3790_v42  ;;  %v2541_v42 = vld [vmem:[%s2954_s6 + $0x178] sm:$0xff] }
 0x22d   : > { %v2108_v6 = vadd.f32 %v3562_v39, %v2072_v45 }
 0x22e   : > { %v1564_v11 = vpop.f32.mrf.mxu2 }
 0x22f   : > { %v1786_v58 = vpop.f32.mrf.mxu3  ;;  %v2140_v50 = vmax.f32 %v2108_v6, 0.0  ;;  %v1629_v51 = vadd.f32 %v1564_v11, %v1404_v62  ;;  %v2542_v62 = vld [vmem:[%s2954_s6 + $0x180] sm:$0xff] }
 0x230   : > { %v1341_v30 = vpop.f32.mrf.mxu1  ;;  %v2590_v11 = vld [vmem:[%s2954_s6 + $0x179] sm:$0xff]  ;;  %v1476_v32 = vpack.c.bf16 %v2542_v62, %v2541_v42 }
 0x231   : > { %v2689_v43 = vpack.c.bf16 %v2140_v50, %v2139_v15  ;;  %v2010_v3 = vpop.f32.mrf.mxu0  ;;  %v1851_v2 = vadd.f32 %v1786_v58, %v1629_v51  ;;  %v1405_v59 = vadd.f32 %v1341_v30, %v3791_v28  ;;  %v2591_v58 = vld [vmem:[%s2954_s6 + $0x181] sm:$0xff] }
 0x232   : > { %v2639_v50 = vld [vmem:[%s2954_s6 + $0x17a] sm:$0xff]  ;;  %v1698_v22 = vpack.c.bf16 %v2591_v58, %v2590_v11 }
 0x233   : > { %2749 = vst [vmem:[%s3577_s5 + $0x20] sm:$0xff] %v2689_v43   ;;  %v2073_v13 = vadd.f32 %v2008_v34, %v1851_v2 }
 0x235   : > { %v2109_v35 = vadd.f32 %v3562_v39, %v2073_v13 }
 0x236   : > { %v1566_v18 = vpop.f32.mrf.mxu2 }
 0x237   : > { %v1788_v52 = vpop.f32.mrf.mxu3  ;;  %v1630_v41 = vadd.f32 %v1566_v18, %v1405_v59  ;;  %v2141_v0 = vmax.f32 %v2109_v35, 0.0 }
 0x238   : > { %v1344_v24 = vpop.f32.mrf.mxu1 }
 0x239   : > { %v1852_v57 = vadd.f32 %v1788_v52, %v1630_v41  ;;  %v2013_v14 = vpop.f32.mrf.mxu0  ;;  %v1406_v16 = vadd.f32 %v1344_v24, %v3398_v48  ;;  %v2640_v48 = vld [vmem:[%s2954_s6 + $0x182] sm:$0xff]  ;;  %s2665_s6 = sshll.u32 %s2913_s16, 7  ;;  %s2228_s16 = scalar_lea.sflag [#allocation3], %s146_s30 }
 0x23a   : > { %v1920_v54 = vpack.c.bf16 %v2640_v48, %v2639_v50  ;;  %s2240_s9 = scalar_lea.hbm %s3755_s3, %s2665_s6 }
 0x23b   : > { %2507 = vmatmul.msk.bf16.gmra.mxu1 %vm253_vm1, %v3611_v26  ;;  %v2074_v29 = vadd.f32 %v2010_v3, %v1852_v57  ;;  %2558 = vmatmul.msk.bf16.gmra.mxu2 %vm253_vm1, %v1475_v8  ;;  %s2243_s11 = sshll.u32 %s2240_s9, 4  ;;  %s2244_s11 = int_to_ptr.hbm [resolvable:$true] %s2243_s11 }
 0x23c   : > { %2607 = vmatmul.msk.bf16.gmra.mxu3 %vm253_vm1, %v1697_v40  ;;  %2656 = vmatmul.msk.bf16.gmra.mxu0 %vm253_vm1, %v1919_v20  ;;  %s2820_s17 = sshra.s32 %s2244_s11, 4  ;;  %s2821_s17 = int_to_ptr.hbm [resolvable:$true] %s2820_s17 }
 0x23d   : > { %v2110_v23 = vadd.f32 %v3562_v39, %v2074_v29  ;;  %s2822_s19 = scalar_lea.hbm %s2821_s17, 128  ;;  %p2827_p13 = scmp.lt.s32.totalorder %s2821_s17, %s3755_s3 }
 0x23e   : > { %v1569_v26 = vpop.f32.mrf.mxu2  ;;  %p2823_p10 = scmp.ne.s32.totalorder %s2821_s17, %s2822_s19  ;;  %p2828_p0 = scmp.lt.s32.totalorder %s2826_s25, %s2822_s19 }
 0x23f   : > { %v1791_v53 = vpop.f32.mrf.mxu3  ;;  %v2142_v47 = vmax.f32 %v2110_v23, 0.0  ;;  %v1631_v21 = vadd.f32 %v1569_v26, %v1406_v16 }
 0x240   : > { %v1346_v34 = vpop.f32.mrf.mxu1  ;;  %p2824_p11 = pnand %p2823_p10, %p2930_p5  ;;  %p2829_p1 = por %p2828_p0, %p2827_p13 }
 0x241   : > { %v2694_v10 = vpack.c.bf16 %v2142_v47, %v2141_v0  ;;  %v2015_v45 = vpop.f32.mrf.mxu0  ;;  %v1853_v6 = vadd.f32 %v1791_v53, %v1631_v21  ;;  %v1407_v15 = vadd.f32 %v1346_v34, %v3418_v19 }
 0x242   : > { %p2825_p12 = pneg %p2824_p11 }
 0x243   : > { %2750 = vst [vmem:[%s3577_s5 + $0x28] sm:$0xff] %v2694_v10   ;;  %v2075_v43 = vadd.f32 %v2013_v14, %v1853_v6 }
 0x244   : > { %p2830_p2 = pnand %p2829_p1, %p2825_p12 }
 0x245   : > { %v2111_v59 = vadd.f32 %v3562_v39, %v2075_v43 }
 0x246   : > { %v1571_v51 = vpop.f32.mrf.mxu2 }
 0x247   : > { %v1793_v30 = vpop.f32.mrf.mxu3  ;;  %v1632_v3 = vadd.f32 %v1571_v51, %v1407_v15  ;;  %v2143_v13 = vmax.f32 %v2111_v59, 0.0 }
 0x248   : > { %v1349_v2 = vpop.f32.mrf.mxu1 }
 0x249   : > { %v1854_v55 = vadd.f32 %v1793_v30, %v1632_v3  ;;  %v2018_v28 = vpop.f32.mrf.mxu0  ;;  %v1408_v44 = vadd.f32 %v1349_v2, %v3423_v4 }
 0x24b   : > { %2508 = vmatmul.msk.bf16.gmra.mxu1 %vm253_vm1, %v3628_v63  ;;  %v2076_v7 = vadd.f32 %v2015_v45, %v1854_v55  ;;  %2559 = vmatmul.msk.bf16.gmra.mxu2 %vm253_vm1, %v1476_v32 }
 0x24c   : > { %2608 = vmatmul.msk.bf16.gmra.mxu3 %vm253_vm1, %v1698_v22  ;;  %2657 = vmatmul.msk.bf16.gmra.mxu0 %vm253_vm1, %v1920_v54 }
 0x24d   : > { %v2112_v19 = vadd.f32 %v3562_v39, %v2076_v7 }
 0x24e   : > { %v1574_v18 = vpop.f32.mrf.mxu2 }
 0x24f   : > { %v1796_v52 = vpop.f32.mrf.mxu3  ;;  %v2144_v41 = vmax.f32 %v2112_v19, 0.0  ;;  %v1633_v24 = vadd.f32 %v1574_v18, %v1408_v44 }
 0x250   : > { %v1351_v63 = vpop.f32.mrf.mxu1 }
 0x251   : > { %v2699_v8 = vpack.c.bf16 %v2144_v41, %v2143_v13  ;;  %v2020_v40 = vpop.f32.mrf.mxu0  ;;  %v1855_v20 = vadd.f32 %v1796_v52, %v1633_v24  ;;  %v1409_v57 = vadd.f32 %v1351_v63, %v3432_v17 }
 0x253   : > { %2751 = vst [vmem:[%s3577_s5 + $0x30] sm:$0xff] %v2699_v8   ;;  %v2077_v29 = vadd.f32 %v2018_v28, %v1855_v20 }
 0x255   : > { %v2113_v53 = vadd.f32 %v3562_v39, %v2077_v29 }
 0x256   : > { %v1576_v14 = vpop.f32.mrf.mxu2 }
 0x257   : > { %v1798_v35 = vpop.f32.mrf.mxu3  ;;  %v1634_v23 = vadd.f32 %v1576_v14, %v1409_v57  ;;  %v2145_v45 = vmax.f32 %v2113_v53, 0.0 }
 0x258   : > { %v1354_v16 = vpop.f32.mrf.mxu1 }
 0x259   : > { %v1856_v26 = vadd.f32 %v1798_v35, %v1634_v23  ;;  %v2023_v4 = vpop.f32.mrf.mxu0  ;;  %v1410_v21 = vadd.f32 %v1354_v16, %v3437_v27 }
 0x25b   : > { %v2078_v0 = vadd.f32 %v2020_v40, %v1856_v26 }
 0x25d   : > { %v2114_v47 = vadd.f32 %v3562_v39, %v2078_v0 }
 0x25e   : > { %v1579_v34 = vpop.f32.mrf.mxu2 }
 0x25f   : > { %v1801_v10 = vpop.f32.mrf.mxu3  ;;  %v2146_v6 = vmax.f32 %v2114_v47, 0.0  ;;  %v1635_v17 = vadd.f32 %v1579_v34, %v1410_v21 }
 0x260   : > { %v1356_v42 = vpop.f32.mrf.mxu1 }
 0x261   : > { %v2704_v62 = vpack.c.bf16 %v2146_v6, %v2145_v45  ;;  %v2025_v11 = vpop.f32.mrf.mxu0  ;;  %v1857_v58 = vadd.f32 %v1801_v10, %v1635_v17  ;;  %v1411_v15 = vadd.f32 %v1356_v42, %v3446_v49 }
 0x263   : > { %2752 = vst [vmem:[%s3577_s5 + $0x38] sm:$0xff] %v2704_v62   ;;  %v2079_v51 = vadd.f32 %v2023_v4, %v1857_v58 }
 0x265   : > { %v2115_v2 = vadd.f32 %v3562_v39, %v2079_v51 }
 0x266   : > { %v1581_v50 = vpop.f32.mrf.mxu2 }
 0x267   : > { %v1803_v48 = vpop.f32.mrf.mxu3  ;;  %v1636_v30 = vadd.f32 %v1581_v50, %v1411_v15  ;;  %v2147_v59 = vmax.f32 %v2115_v2, 0.0 }
 0x268   : > { %v1359_v43 = vpop.f32.mrf.mxu1 }
 0x269   : > { %v1858_v3 = vadd.f32 %v1803_v48, %v1636_v30  ;;  %v2028_v27 = vpop.f32.mrf.mxu0  ;;  %v1412_v54 = vadd.f32 %v1359_v43, %v3451_v36 }
 0x26b   : > { %v2080_v32 = vadd.f32 %v2025_v11, %v1858_v3 }
 0x26d   : > { %v2116_v22 = vadd.f32 %v3562_v39, %v2080_v32 }
 0x26e   : > { %v1584_v55 = vpop.f32.mrf.mxu2 }
 0x26f   : > { %v1806_v28 = vpop.f32.mrf.mxu3  ;;  %v2148_v7 = vmax.f32 %v2116_v22, 0.0  ;;  %v1637_v49 = vadd.f32 %v1584_v55, %v1412_v54 }
 0x270   : > { %v1361_v19 = vpop.f32.mrf.mxu1 }
 0x271   : > { %v2709_v44 = vpack.c.bf16 %v2148_v7, %v2147_v59  ;;  %v2030_v18 = vpop.f32.mrf.mxu0  ;;  %v1859_v52 = vadd.f32 %v1806_v28, %v1637_v49  ;;  %v1413_v13 = vadd.f32 %v1361_v19, %v3461_v5 }
 0x273   : > { %2753 = vst [vmem:[%s3577_s5 + $0x40] sm:$0xff] %v2709_v44   ;;  %v2081_v63 = vadd.f32 %v2028_v27, %v1859_v52 }
 0x275   : > { %v2117_v57 = vadd.f32 %v3562_v39, %v2081_v63 }
 0x276   : > { %v1586_v41 = vpop.f32.mrf.mxu2 }
 0x277   : > { %v1808_v24 = vpop.f32.mrf.mxu3  ;;  %v1638_v8 = vadd.f32 %v1586_v41, %v1413_v13  ;;  %v2149_v26 = vmax.f32 %v2117_v57, 0.0 }
 0x278   : > { %v1364_v40 = vpop.f32.mrf.mxu1 }
 0x279   : > { %v1860_v20 = vadd.f32 %v1808_v24, %v1638_v8  ;;  %v2033_v36 = vpop.f32.mrf.mxu0  ;;  %v1414_v29 = vadd.f32 %v1364_v40, %v3466_v38 }
 0x27b   : > { %v2082_v14 = vadd.f32 %v2030_v18, %v1860_v20 }
 0x27d   : > { %v2118_v35 = vadd.f32 %v3562_v39, %v2082_v14 }
 0x27e   : > { %v1589_v23 = vpop.f32.mrf.mxu2 }
 0x27f   : > { %v1811_v16 = vpop.f32.mrf.mxu3  ;;  %v2150_v4 = vmax.f32 %v2118_v35, 0.0  ;;  %v1639_v5 = vadd.f32 %v1589_v23, %v1414_v29 }
 0x280   : > { %v1366_v53 = vpop.f32.mrf.mxu1 }
 0x281   : > { %v2714_v0 = vpack.c.bf16 %v2150_v4, %v2149_v26  ;;  %v2035_v47 = vpop.f32.mrf.mxu0  ;;  %v1861_v21 = vadd.f32 %v1811_v16, %v1639_v5  ;;  %v1415_v34 = vadd.f32 %v1366_v53, %v3476_v61 }
 0x283   : > { %2754 = vst [vmem:[%s3577_s5 + $0x48] sm:$0xff] %v2714_v0   ;;  %v2083_v6 = vadd.f32 %v2033_v36, %v1861_v21 }
 0x285   : > { %v2119_v11 = vadd.f32 %v3562_v39, %v2083_v6 }
 0x286   : > { %v1591_v10 = vpop.f32.mrf.mxu2 }
 0x287   : > { %v1813_v45 = vpop.f32.mrf.mxu3  ;;  %v1640_v17 = vadd.f32 %v1591_v10, %v1415_v34  ;;  %v2151_v30 = vmax.f32 %v2119_v11, 0.0 }
 0x288   : > { %v1369_v42 = vpop.f32.mrf.mxu1 }
 0x289   : > { %v1862_v62 = vadd.f32 %v1813_v45, %v1640_v17  ;;  %v2038_v38 = vpop.f32.mrf.mxu0  ;;  %v1416_v50 = vadd.f32 %v1369_v42, %v3481_v1 }
 0x28b   : > { %v2084_v58 = vadd.f32 %v2035_v47, %v1862_v62 }
 0x28d   : > { %v2120_v15 = vadd.f32 %v3562_v39, %v2084_v58 }
 0x28e   : > { %v1594_v48 = vpop.f32.mrf.mxu2 }
 0x28f   : > { %v1816_v51 = vpop.f32.mrf.mxu3  ;;  %v2152_v43 = vmax.f32 %v2120_v15, 0.0  ;;  %v1641_v61 = vadd.f32 %v1594_v48, %v1416_v50 }
 0x290   : > { %v1371_v3 = vpop.f32.mrf.mxu1 }
 0x291   : > { %v2719_v27 = vpack.c.bf16 %v2152_v43, %v2151_v30  ;;  %v2040_v2 = vpop.f32.mrf.mxu0  ;;  %v1863_v32 = vadd.f32 %v1816_v51, %v1641_v61  ;;  %v1417_v22 = vadd.f32 %v1371_v3, %v3491_v46 }
 0x293   : > { %2755 = vst [vmem:[%s3577_s5 + $0x50] sm:$0xff] %v2719_v27   ;;  %v2085_v28 = vadd.f32 %v2038_v38, %v1863_v32 }
 0x295   : > { %v2121_v19 = vadd.f32 %v3562_v39, %v2085_v28 }
 0x296   : > { %v1596_v54 = vpop.f32.mrf.mxu2 }
 0x297   : > { %v1818_v55 = vpop.f32.mrf.mxu3  ;;  %v1642_v59 = vadd.f32 %v1596_v54, %v1417_v22  ;;  %v2153_v24 = vmax.f32 %v2121_v19, 0.0 }
 0x298   : > { %v1374_v7 = vpop.f32.mrf.mxu1 }
 0x299   : > { %v1864_v49 = vadd.f32 %v1818_v55, %v1642_v59  ;;  %v2043_v1 = vpop.f32.mrf.mxu0  ;;  %v1418_v52 = vadd.f32 %v1374_v7, %v3496_v37 }
 0x29b   : > { %v2086_v44 = vadd.f32 %v2040_v2, %v1864_v49 }
 0x29d   : > { %v2122_v18 = vadd.f32 %v3562_v39, %v2086_v44 }
 0x29e   : > { %v1599_v13 = vpop.f32.mrf.mxu2 }
 0x29f   : > { %v1821_v41 = vpop.f32.mrf.mxu3  ;;  %v2154_v63 = vmax.f32 %v2122_v18, 0.0  ;;  %v1643_v46 = vadd.f32 %v1599_v13, %v1418_v52 }
 0x2a0   : > { %v1376_v8 = vpop.f32.mrf.mxu1 }
 0x2a1   : > { %v2724_v40 = vpack.c.bf16 %v2154_v63, %v2153_v24  ;;  %v2045_v20 = vpop.f32.mrf.mxu0  ;;  %v1865_v36 = vadd.f32 %v1821_v41, %v1643_v46  ;;  %v1419_v57 = vadd.f32 %v1376_v8, %v3506_v9 }
 0x2a3   : > { %2756 = vst [vmem:[%s3577_s5 + $0x58] sm:$0xff] %v2724_v40   ;;  %v2087_v29 = vadd.f32 %v2043_v1, %v1865_v36 }
 0x2a5   : > { %v2123_v4 = vadd.f32 %v3562_v39, %v2087_v29 }
 0x2a6   : > { %v1601_v14 = vpop.f32.mrf.mxu2 }
 0x2a7   : > { %v1823_v35 = vpop.f32.mrf.mxu3  ;;  %v1644_v23 = vadd.f32 %v1601_v14, %v1419_v57  ;;  %v2155_v34 = vmax.f32 %v2123_v4, 0.0 }
 0x2a8   : > { %v1379_v16 = vpop.f32.mrf.mxu1 }
 0x2a9   : > { %v1866_v26 = vadd.f32 %v1823_v35, %v1644_v23  ;;  %v2048_v37 = vpop.f32.mrf.mxu0  ;;  %v1420_v0 = vadd.f32 %v1379_v16, %v3511_v56 }
 0x2ab   : > { %v2088_v5 = vadd.f32 %v2045_v20, %v1866_v26 }
 0x2ad   : > { %v2124_v53 = vadd.f32 %v3562_v39, %v2088_v5 }
 0x2ae   : > { %v1604_v47 = vpop.f32.mrf.mxu2 }
 0x2af   : > { %v1826_v21 = vpop.f32.mrf.mxu3  ;;  %v2156_v10 = vmax.f32 %v2124_v53, 0.0  ;;  %v1645_v9 = vadd.f32 %v1604_v47, %v1420_v0 }
 0x2b0   : > { %v1381_v45 = vpop.f32.mrf.mxu1 }
 0x2b1   : > { %v2729_v6 = vpack.c.bf16 %v2156_v10, %v2155_v34  ;;  %v2050_v17 = vpop.f32.mrf.mxu0  ;;  %v1867_v42 = vadd.f32 %v1826_v21, %v1645_v9  ;;  %v1421_v62 = vadd.f32 %v1381_v45, %v3521_v12 }
 0x2b3   : > { %2757 = vst [vmem:[%s3577_s5 + $0x60] sm:$0xff] %v2729_v6   ;;  %v2089_v58 = vadd.f32 %v2048_v37, %v1867_v42 }
 0x2b5   : > { %v2125_v56 = vadd.f32 %v3562_v39, %v2089_v58 }
 0x2b6   : > { %v1606_v38 = vpop.f32.mrf.mxu2 }
 0x2b7   : > { %v1828_v11 = vpop.f32.mrf.mxu3  ;;  %v1646_v15 = vadd.f32 %v1606_v38, %v1421_v62  ;;  %v2157_v2 = vmax.f32 %v2125_v56, 0.0 }
 0x2b8   : > { %v1384_v50 = vpop.f32.mrf.mxu1 }
 0x2b9   : > { %v1868_v48 = vadd.f32 %v1828_v11, %v1646_v15  ;;  %v2053_v30 = vpop.f32.mrf.mxu0  ;;  %v1422_v61 = vadd.f32 %v1384_v50, %v3526_v60 }
 0x2bb   : > { %v2090_v51 = vadd.f32 %v2050_v17, %v1868_v48 }
 0x2bd   : > { %v2126_v43 = vadd.f32 %v3562_v39, %v2090_v51 }
 0x2be   : > { %v1609_v3 = vpop.f32.mrf.mxu2 }
 0x2bf   : > { %v1831_v27 = vpop.f32.mrf.mxu3  ;;  %v2158_v32 = vmax.f32 %v2126_v43, 0.0  ;;  %v1647_v12 = vadd.f32 %v1609_v3, %v1422_v61 }
 0x2c0   : > { %v1386_v22 = vpop.f32.mrf.mxu1 }
 0x2c1   : > { %v2734_v54 = vpack.c.bf16 %v2158_v32, %v2157_v2  ;;  %v1869_v55 = vadd.f32 %v1831_v27, %v1647_v12  ;;  %v1423_v28 = vadd.f32 %v1386_v22, %v3536_v33  ;;  %v2055_v59 = vpop.f32.mrf.mxu0 }
 0x2c3   : > { %2758 = vst [vmem:[%s3577_s5 + $0x68] sm:$0xff] %v2734_v54   ;;  %v2091_v1 = vadd.f32 %v2053_v30, %v1869_v55 }
 0x2c5   : > { %v2127_v60 = vadd.f32 %v3562_v39, %v2091_v1 }
 0x2c6   : > { %v1611_v7 = vpop.f32.mrf.mxu2 }
 0x2c7   : > { %v1833_v49 = vpop.f32.mrf.mxu3  ;;  %v1648_v19 = vadd.f32 %v1611_v7, %v1423_v28  ;;  %v2159_v46 = vmax.f32 %v2127_v60, 0.0 }
 0x2c8   : > { %v1389_v44 = vpop.f32.mrf.mxu1 }
 0x2c9   : > { %v1870_v18 = vadd.f32 %v1833_v49, %v1648_v19  ;;  %v1424_v41 = vadd.f32 %v1389_v44, %v3541_v25  ;;  %v2058_v40 = vpop.f32.mrf.mxu0 }
 0x2cb   : > { %v2092_v52 = vadd.f32 %v2055_v59, %v1870_v18 }
 0x2cd   : > { %v2128_v13 = vadd.f32 %v3562_v39, %v2092_v52 }
 0x2ce   : > { %v1614_v24 = vpop.f32.mrf.mxu2 }
 0x2cf   : > { %v1836_v63 = vpop.f32.mrf.mxu3  ;;  %v2160_v33 = vmax.f32 %v2128_v13, 0.0  ;;  %v1649_v8 = vadd.f32 %v1614_v24, %v1424_v41 }
 0x2d0   : > { %v1391_v36 = vpop.f32.mrf.mxu1 }
 0x2d1   : > { %v2739_v20 = vpack.c.bf16 %v2160_v33, %v2159_v46  ;;  %v1871_v57 = vadd.f32 %v1836_v63, %v1649_v8  ;;  %v1425_v14 = vadd.f32 %v1391_v36, %v3551_v31  ;;  %v2060_v26 = vpop.f32.mrf.mxu0 }
 0x2d3   : > { %2759 = vst [vmem:[%s3577_s5 + $0x70] sm:$0xff] %v2739_v20   ;;  %v2093_v29 = vadd.f32 %v2058_v40, %v1871_v57 }
 0x2d5   : > { %v2129_v37 = vadd.f32 %v3562_v39, %v2093_v29 }
 0x2d6   : > { %v1616_v35 = vpop.f32.mrf.mxu2 }
 0x2d7   : > { %v1650_v23 = vadd.f32 %v1616_v35, %v1425_v14  ;;  %v1838_v25 = vpop.f32.mrf.mxu3  ;;  %v2161_v31 = vmax.f32 %v2129_v37, 0.0 }
 0x2d9   : > { %v1872_v16 = vadd.f32 %v1838_v25, %v1650_v23 }
 0x2db   : > { %v2094_v4 = vadd.f32 %v2060_v26, %v1872_v16 }
 0x2dd   : > { %v2130_v5 = vadd.f32 %v3562_v39, %v2094_v4 }
 0x2df   : > { %v2162_v53 = vmax.f32 %v2130_v5, 0.0 }
 0x2e1   : > { %v2744_v0 = vpack.c.bf16 %v2162_v53, %v2161_v31 }
 0x2e3   : > { %2760 = vst [vmem:[%s3577_s5 + $0x78] sm:$0xff] %v2744_v0  }
 0x2e4   : > { %2833 = shalt.err (!%p2830_p2)
}
 0x2e5   : > { %s2870_s28 = smov 64   ;;  %s2871_s29 = smov 4  }
 0x2e6   : > { %2764 = dma.vmem_to_hbm [thread:$0]  (%p2930_p5), %s2242_s10, 2048, %s2244_s11, %s2228_s16, %s2870_s28, %s2870_s28, %s2871_s29  }
 0x2e7 PF: > { %p2770_p3 = scmp.ge.s32.totalorder %s2868_s15, 2  ;;  %s2258_s30 = sand.u32 1, %s2856_s12  }
 0x2e8   : > { %s2259_s4 = scalar_lea.sflag [#allocation3], %s2258_s30 }
 0x2e9   : > { %p2767_p4 = pnand %p2770_p3, %p2934_p6 }
 0x2eb   : > { %p2768_p7 = pneg %p2767_p4 }
 0x2ed   : > { %2851 = dma.done.wait (%p2768_p7), %s2259_s4, 2048  }
 0x2ee   : > { %2853 = vsyncadd (%p2768_p7), %s2259_s4, 4294965248  ;;  %p13_p8 = scmp.ge.s32.totalorder %s2917_s18, 6   ;;  %s3792_s12 = smov %s2860_s13 }
 0x2ef   : > { %s3793_s13 = smov %s2864_s14  ;;  %s3794_s14 = smov %s2928_s21 }
 0x2f0   : > { %s3795_s15 = smov %s2917_s18  ;;  %15 = sbr.rel (!%p13_p8) target bundleno = 3 (0x3), region = 75 }
 0x2f5   :  { %2265 = vsyncpa [#allocation3], 1 }
 0x2f6   :  { %2267 = vsyncpa [#allocation3 + $0x1], 1 }

</bundles_post_ra>
